<compile_context>
chip_gen: v6e
topology: v6e:2x2x1
jax: 0.10.0
libtpu: 0.0.40
codegen_flags: <defaults>
</compile_context>

<pallas_src>
import math

import jax
import jax.numpy as jnp
from jax.experimental import pallas as pl
from jax.experimental.pallas import tpu as pltpu

# ---- small BERT-like config ----------------------------------------------
VOCAB = 100
B = 2            # batch
S = 8            # sequence length
H = 32           # hidden size
NUM_HEADS = 2
HEAD_DIM = H // NUM_HEADS
INTER = 64       # FFN intermediate size
NUM_LAYERS = 2
LN_EPS = 1e-12
MAX_POS = 16
BS = B * S


# ---- in-kernel helpers ----------------------------------------------------
def _layer_norm(x, gamma, beta):
    # x: [N, H], gamma/beta: [1, H]
    mean = jnp.mean(x, axis=-1, keepdims=True)
    var = jnp.mean(jnp.square(x - mean), axis=-1, keepdims=True)
    inv = jax.lax.rsqrt(var + LN_EPS)
    return (x - mean) * inv * gamma + beta


def _gelu(x):
    # TODO(synk): HF BERT defaults to erf-based gelu; tanh approximation
    # (maps cleanly to the EUP) differs at the ~1e-3 level.
    c = math.sqrt(2.0 / math.pi)
    return 0.5 * x * (1.0 + jnp.tanh(c * (x + 0.044715 * x * x * x)))


# ---- single fused Pallas kernel -------------------------------------------
def fused_encoder_kernel(
        emb_ref, mask_ref, emb_g_ref, emb_b_ref,
        wqkv_ref, bqkv_ref, wo_ref, bo_ref,
        ln1_g_ref, ln1_b_ref, wi_ref, bi_ref, wp_ref, bp_ref,
        ln2_g_ref, ln2_b_ref, pool_w_ref, pool_b_ref,
        hs_ref, pool_ref):
    # emb_ref:  [B*S, H] embedding sums (word+pos+type)
    # mask_ref: [B, 1, S] additive attention mask
    # stacked layer weights: leading dim = NUM_LAYERS
    # hs_ref:   [L+1, B, S, H] stacked hidden states
    # pool_ref: [B, H] pooler output
    scale = 1.0 / math.sqrt(HEAD_DIM)
    add_mask = mask_ref[...]                                     # [B, 1, S]

    # ---- embedding LayerNorm ----
    h = _layer_norm(emb_ref[...], emb_g_ref[...], emb_b_ref[...])  # [BS, H]
    hs_ref[0] = h.reshape(B, S, H)

    # ---- transformer layers (static loop, weights resident in VMEM) ----
    for li in range(NUM_LAYERS):
        # fused QKV projection on the whole batch slab
        qkv = jnp.dot(h, wqkv_ref[li],
                      preferred_element_type=jnp.float32) + bqkv_ref[li]
        qkv3 = qkv.reshape(B, S, 3 * H)                          # free split
        q = qkv3[:, :, 0 * H:1 * H]                              # [B, S, H]
        k = qkv3[:, :, 1 * H:2 * H]
        v = qkv3[:, :, 2 * H:3 * H]

        wo = wo_ref[li]                                          # [H, H]
        attn_out = jnp.zeros((BS, H), jnp.float32)
        # batched-over-B einsums; per-head ctx is folded straight into the
        # output projection via a row-slice of wo (no lane-axis concat).
        for hd in range(NUM_HEADS):
            lo, hi = hd * HEAD_DIM, (hd + 1) * HEAD_DIM
            qh = q[:, :, lo:hi]                                  # [B, S, dh]
            kh = k[:, :, lo:hi]
            vh = v[:, :, lo:hi]
            scores = jnp.einsum('bqd,bkd->bqk', qh, kh,
                                preferred_element_type=jnp.float32) * scale
            scores = scores + add_mask                           # mask keys
            scores = scores - jnp.max(scores, axis=-1, keepdims=True)
            probs = jnp.exp(scores)
            probs = probs * pl.reciprocal(
                jnp.sum(probs, axis=-1, keepdims=True), approx=True)
            ctx = jnp.einsum('bqk,bkd->bqd', probs, vh,
                             preferred_element_type=jnp.float32)  # [B,S,dh]
            attn_out = attn_out + jnp.dot(
                ctx.reshape(BS, HEAD_DIM), wo[lo:hi, :],
                preferred_element_type=jnp.float32)
        attn_out = attn_out + bo_ref[li]

        h1 = _layer_norm(h + attn_out, ln1_g_ref[li], ln1_b_ref[li])

        inter = _gelu(jnp.dot(h1, wi_ref[li],
                              preferred_element_type=jnp.float32) + bi_ref[li])
        ffn = jnp.dot(inter, wp_ref[li],
                      preferred_element_type=jnp.float32) + bp_ref[li]
        h = _layer_norm(h1 + ffn, ln2_g_ref[li], ln2_b_ref[li])

        hs_ref[li + 1] = h.reshape(B, S, H)

    # ---- pooler fused into the epilogue: tanh(CLS @ W + b) ----
    cls = jnp.concatenate([h[b * S:b * S + 1, :] for b in range(B)], axis=0)
    pool_ref[...] = jnp.tanh(
        jnp.dot(cls, pool_w_ref[...],
                preferred_element_type=jnp.float32) + pool_b_ref[...])


# ---- parameter init (deterministic, synthetic) ----------------------------
def init_params(key):
    def nrm(k, shape, std=0.02):
        return (std * jax.random.normal(k, shape)).astype(jnp.float32)

    keys = jax.random.split(key, 4 + NUM_LAYERS)
    params = {
        "word_emb": nrm(keys[0], (VOCAB, H)),
        "pos_emb": nrm(keys[1], (MAX_POS, H)),
        "type_emb": nrm(keys[2], (2, H)),
        "emb_ln_g": jnp.ones((1, H), jnp.float32),
        "emb_ln_b": jnp.zeros((1, H), jnp.float32),
        "pool_w": nrm(keys[3], (H, H)),
        "pool_b": jnp.zeros((1, H), jnp.float32),
    }
    wqkv, bqkv, wo, bo = [], [], [], []
    ln1_g, ln1_b, wi, bi, wp, bp, ln2_g, ln2_b = ([] for _ in range(8))
    for li in range(NUM_LAYERS):
        lk = jax.random.split(keys[4 + li], 6)
        wq, wk, wv = nrm(lk[0], (H, H)), nrm(lk[1], (H, H)), nrm(lk[2], (H, H))
        wqkv.append(jnp.concatenate([wq, wk, wv], axis=1))       # fused [H,3H]
        bqkv.append(jnp.zeros((1, 3 * H), jnp.float32))
        wo.append(nrm(lk[3], (H, H)))
        bo.append(jnp.zeros((1, H), jnp.float32))
        ln1_g.append(jnp.ones((1, H), jnp.float32))
        ln1_b.append(jnp.zeros((1, H), jnp.float32))
        wi.append(nrm(lk[4], (H, INTER)))
        bi.append(jnp.zeros((1, INTER), jnp.float32))
        wp.append(nrm(lk[5], (INTER, H)))
        bp.append(jnp.zeros((1, H), jnp.float32))
        ln2_g.append(jnp.ones((1, H), jnp.float32))
        ln2_b.append(jnp.zeros((1, H), jnp.float32))
    stack = lambda xs: jnp.stack(xs, axis=0)
    params.update({
        "wqkv": stack(wqkv), "bqkv": stack(bqkv),
        "wo": stack(wo), "bo": stack(bo),
        "ln1_g": stack(ln1_g), "ln1_b": stack(ln1_b),
        "wi": stack(wi), "bi": stack(bi),
        "wp": stack(wp), "bp": stack(bp),
        "ln2_g": stack(ln2_g), "ln2_b": stack(ln2_b),
    })
    return params


# ---- full forward (mirrors WordEncoder.forward semantics) ------------------
@jax.jit
def word_encoder_forward(params, input_ids, atn_mask=None):
    # plain-JAX glue: embedding gathers + additive mask
    word = params["word_emb"][input_ids]                         # [B,S,H]
    pos = params["pos_emb"][jnp.arange(S)][None, :, :]           # [1,S,H]
    typ = params["type_emb"][0][None, None, :]                   # [1,1,H]
    emb_sum = (word + pos + typ).astype(jnp.float32).reshape(BS, H)

    if atn_mask is None:
        add_mask = jnp.zeros((B, 1, S), jnp.float32)
    else:
        add_mask = ((1.0 - atn_mask.astype(jnp.float32)) * -10000.0
                    ).reshape(B, 1, S)

    # single fused Pallas call: whole model (weights + activations) in VMEM
    hs_stack, pooled = pl.pallas_call(
        fused_encoder_kernel,
        out_shape=(
            jax.ShapeDtypeStruct((NUM_LAYERS + 1, B, S, H), jnp.float32),
            jax.ShapeDtypeStruct((B, H), jnp.float32),
        ),
        compiler_params=pltpu.CompilerParams(vmem_limit_bytes=32 * 1024 * 1024),
    )(emb_sum, add_mask,
      params["emb_ln_g"], params["emb_ln_b"],
      params["wqkv"], params["bqkv"], params["wo"], params["bo"],
      params["ln1_g"], params["ln1_b"], params["wi"], params["bi"],
      params["wp"], params["bp"], params["ln2_g"], params["ln2_b"],
      params["pool_w"], params["pool_b"])

    hidden_states = tuple(hs_stack[i] for i in range(NUM_LAYERS + 1))

    # return_dict=True, output_hidden_states=True analogue
    # TODO(synk): attentions / cross-attentions outputs are not reproduced.
    return {
        "last_hidden_state": hidden_states[-1],      # [B, S, H]
        "pooler_output": pooled,                     # [B, H]
        "hidden_states": hidden_states,              # L+1 tensors of [B,S,H]
    }


if __name__ == "__main__":
    key = jax.random.PRNGKey(0)
    pkey, dkey = jax.random.split(key)
    params = init_params(pkey)

    input_ids = jax.random.randint(dkey, (B, S), 0, VOCAB, dtype=jnp.int32)
    atn_mask = jnp.ones((B, S), jnp.int32)

    outputs = word_encoder_forward(params, input_ids, atn_mask)

    jax.block_until_ready(outputs["last_hidden_state"])
    jax.block_until_ready(outputs["pooler_output"])
    for hs in outputs["hidden_states"]:
        jax.block_until_ready(hs)

    assert outputs["last_hidden_state"].shape == (B, S, H)
    assert outputs["pooler_output"].shape == (B, H)
    assert len(outputs["hidden_states"]) == NUM_LAYERS + 1
    print("KERNEL_OK")
</pallas_src>

<mosaic_0001>
module attributes {stable_mosaic.version = 11 : i64} {
  func.func @fused_encoder_kernel(%arg0: memref<16x32xf32, #tpu.memory_space<vmem>>, %arg1: memref<2x1x8xf32, #tpu.memory_space<vmem>>, %arg2: memref<1x32xf32, #tpu.memory_space<vmem>>, %arg3: memref<1x32xf32, #tpu.memory_space<vmem>>, %arg4: memref<2x32x96xf32, #tpu.memory_space<vmem>>, %arg5: memref<2x1x96xf32, #tpu.memory_space<vmem>>, %arg6: memref<2x32x32xf32, #tpu.memory_space<vmem>>, %arg7: memref<2x1x32xf32, #tpu.memory_space<vmem>>, %arg8: memref<2x1x32xf32, #tpu.memory_space<vmem>>, %arg9: memref<2x1x32xf32, #tpu.memory_space<vmem>>, %arg10: memref<2x32x64xf32, #tpu.memory_space<vmem>>, %arg11: memref<2x1x64xf32, #tpu.memory_space<vmem>>, %arg12: memref<2x64x32xf32, #tpu.memory_space<vmem>>, %arg13: memref<2x1x32xf32, #tpu.memory_space<vmem>>, %arg14: memref<2x1x32xf32, #tpu.memory_space<vmem>>, %arg15: memref<2x1x32xf32, #tpu.memory_space<vmem>>, %arg16: memref<32x32xf32, #tpu.memory_space<vmem>>, %arg17: memref<1x32xf32, #tpu.memory_space<vmem>>, %arg18: memref<3x2x8x32xf32, #tpu.memory_space<vmem>>, %arg19: memref<2x32xf32, #tpu.memory_space<vmem>>) attributes {dimension_semantics = [], scalar_prefetch = 0 : i64, scratch_operands = 0 : i64, tpu.core_type = #tpu.core_type<tc>} {
    %c0 = arith.constant 0 : index
    %c0_0 = arith.constant 0 : index
    %c0_1 = arith.constant 0 : index
    %0 = vector.load %arg1[%c0, %c0_0, %c0_1] : memref<2x1x8xf32, #tpu.memory_space<vmem>>, vector<2x1x8xf32>
    %c0_2 = arith.constant 0 : index
    %c0_3 = arith.constant 0 : index
    %1 = vector.load %arg0[%c0_2, %c0_3] : memref<16x32xf32, #tpu.memory_space<vmem>>, vector<16x32xf32>
    %c0_4 = arith.constant 0 : index
    %c0_5 = arith.constant 0 : index
    %2 = vector.load %arg2[%c0_4, %c0_5] : memref<1x32xf32, #tpu.memory_space<vmem>>, vector<1x32xf32>
    %c0_6 = arith.constant 0 : index
    %c0_7 = arith.constant 0 : index
    %3 = vector.load %arg3[%c0_6, %c0_7] : memref<1x32xf32, #tpu.memory_space<vmem>>, vector<1x32xf32>
    %cst = arith.constant dense<0.000000e+00> : vector<16xf32>
    %4 = vector.multi_reduction <add>, %1, %cst [1] : vector<16x32xf32> to vector<16xf32>
    %5 = vector.shape_cast %4 : vector<16xf32> to vector<16x1xf32>
    %cst_8 = arith.constant 3.200000e+01 : f32
    %6 = vector.broadcast %cst_8 : f32 to vector<16x1xf32>
    %7 = arith.divf %5, %6 : vector<16x1xf32>
    %8 = vector.broadcast %7 : vector<16x1xf32> to vector<16x32xf32>
    %9 = arith.subf %1, %8 : vector<16x32xf32>
    %10 = arith.mulf %9, %9 : vector<16x32xf32>
    %cst_9 = arith.constant dense<0.000000e+00> : vector<16xf32>
    %11 = vector.multi_reduction <add>, %10, %cst_9 [1] : vector<16x32xf32> to vector<16xf32>
    %12 = vector.shape_cast %11 : vector<16xf32> to vector<16x1xf32>
    %cst_10 = arith.constant 3.200000e+01 : f32
    %13 = vector.broadcast %cst_10 : f32 to vector<16x1xf32>
    %14 = arith.divf %12, %13 : vector<16x1xf32>
    %cst_11 = arith.constant 9.99999996E-13 : f32
    %15 = vector.broadcast %cst_11 : f32 to vector<16x1xf32>
    %16 = arith.addf %14, %15 : vector<16x1xf32>
    %17 = math.rsqrt %16 : vector<16x1xf32>
    %18 = vector.broadcast %7 : vector<16x1xf32> to vector<16x32xf32>
    %19 = arith.subf %1, %18 : vector<16x32xf32>
    %20 = vector.broadcast %17 : vector<16x1xf32> to vector<16x32xf32>
    %21 = arith.mulf %19, %20 : vector<16x32xf32>
    %22 = vector.broadcast %2 : vector<1x32xf32> to vector<16x32xf32>
    %23 = arith.mulf %21, %22 : vector<16x32xf32>
    %24 = vector.broadcast %3 : vector<1x32xf32> to vector<16x32xf32>
    %25 = arith.addf %23, %24 : vector<16x32xf32>
    %26 = vector.shape_cast %25 : vector<16x32xf32> to vector<2x8x32xf32>
    %c0_12 = arith.constant 0 : index
    %c0_13 = arith.constant 0 : index
    %c0_14 = arith.constant 0 : index
    %c0_15 = arith.constant 0 : index
    %27 = vector.load %arg18[%c0_12, %c0_13, %c0_14, %c0_15] : memref<3x2x8x32xf32, #tpu.memory_space<vmem>>, vector<1x2x8x32xf32>
    %28 = vector.shape_cast %27 : vector<1x2x8x32xf32> to vector<2x8x32xf32>
    %29 = vector.shape_cast %26 : vector<2x8x32xf32> to vector<1x2x8x32xf32>
    tpu.vector_store %arg18[%c0_12, %c0_13, %c0_14, %c0_15], %29 {strides = array<i32>} : memref<3x2x8x32xf32, #tpu.memory_space<vmem>>, vector<1x2x8x32xf32>,
    %c0_16 = arith.constant 0 : index
    %c0_17 = arith.constant 0 : index
    %c0_18 = arith.constant 0 : index
    %30 = vector.load %arg4[%c0_16, %c0_17, %c0_18] : memref<2x32x96xf32, #tpu.memory_space<vmem>>, vector<1x32x96xf32>
    %31 = vector.shape_cast %30 : vector<1x32x96xf32> to vector<32x96xf32>
    %cst_19 = arith.constant dense<0.000000e+00> : vector<16x96xf32>
    %32 = tpu.matmul %25, %31, %cst_19 {dimension_numbers = #tpu.dot_dimension_numbers<[1], [0], [0], [1], [0, 0, 1, 1], [], []>} : vector<16x32xf32>, vector<32x96xf32>, vector<16x96xf32> -> vector<16x96xf32>
    %c0_20 = arith.constant 0 : index
    %c0_21 = arith.constant 0 : index
    %c0_22 = arith.constant 0 : index
    %33 = vector.load %arg5[%c0_20, %c0_21, %c0_22] : memref<2x1x96xf32, #tpu.memory_space<vmem>>, vector<1x1x96xf32>
    %34 = vector.shape_cast %33 : vector<1x1x96xf32> to vector<1x96xf32>
    %35 = vector.broadcast %34 : vector<1x96xf32> to vector<16x96xf32>
    %36 = arith.addf %32, %35 : vector<16x96xf32>
    %37 = vector.shape_cast %36 : vector<16x96xf32> to vector<2x8x96xf32>
    %38 = vector.extract_strided_slice %37 {offsets = [0, 0, 0], sizes = [2, 8, 32], strides = [1, 1, 1]} : vector<2x8x96xf32> to vector<2x8x32xf32>
    %39 = vector.extract_strided_slice %37 {offsets = [0, 0, 32], sizes = [2, 8, 32], strides = [1, 1, 1]} : vector<2x8x96xf32> to vector<2x8x32xf32>
    %40 = vector.extract_strided_slice %37 {offsets = [0, 0, 64], sizes = [2, 8, 32], strides = [1, 1, 1]} : vector<2x8x96xf32> to vector<2x8x32xf32>
    %c0_23 = arith.constant 0 : index
    %c0_24 = arith.constant 0 : index
    %c0_25 = arith.constant 0 : index
    %41 = vector.load %arg6[%c0_23, %c0_24, %c0_25] : memref<2x32x32xf32, #tpu.memory_space<vmem>>, vector<1x32x32xf32>
    %42 = vector.shape_cast %41 : vector<1x32x32xf32> to vector<32x32xf32>
    %cst_26 = arith.constant 0.000000e+00 : f32
    %43 = vector.broadcast %cst_26 : f32 to vector<16x32xf32>
    %44 = vector.extract_strided_slice %38 {offsets = [0, 0, 0], sizes = [2, 8, 16], strides = [1, 1, 1]} : vector<2x8x32xf32> to vector<2x8x16xf32>
    %45 = vector.extract_strided_slice %39 {offsets = [0, 0, 0], sizes = [2, 8, 16], strides = [1, 1, 1]} : vector<2x8x32xf32> to vector<2x8x16xf32>
    %46 = vector.extract_strided_slice %40 {offsets = [0, 0, 0], sizes = [2, 8, 16], strides = [1, 1, 1]} : vector<2x8x32xf32> to vector<2x8x16xf32>
    "tpu.trace_start"() <{level = 10 : i32, message = "bqd,bkd->bqk"}> : () -> ()
    %cst_27 = arith.constant dense<0.000000e+00> : vector<2x8x8xf32>
    %47 = tpu.matmul %44, %45, %cst_27 {dimension_numbers = #tpu.dot_dimension_numbers<[2], [2], [1], [1], [0, 0, 0, 1, 1, 1], [0], [0]>} : vector<2x8x16xf32>, vector<2x8x16xf32>, vector<2x8x8xf32> -> vector<2x8x8xf32>
    "tpu.trace_stop"() : () -> ()
    %cst_28 = arith.constant 2.500000e-01 : f32
    %48 = vector.broadcast %cst_28 : f32 to vector<2x8x8xf32>
    %49 = arith.mulf %47, %48 : vector<2x8x8xf32>
    %50 = vector.broadcast %0 : vector<2x1x8xf32> to vector<2x8x8xf32>
    %51 = arith.addf %49, %50 : vector<2x8x8xf32>
    %cst_29 = arith.constant dense<0xFF800000> : vector<2x8xf32>
    %52 = vector.multi_reduction <maximumf>, %51, %cst_29 [2] : vector<2x8x8xf32> to vector<2x8xf32>
    %53 = vector.shape_cast %52 : vector<2x8xf32> to vector<2x8x1xf32>
    %54 = vector.broadcast %53 : vector<2x8x1xf32> to vector<2x8x8xf32>
    %55 = arith.subf %51, %54 : vector<2x8x8xf32>
    %56 = math.exp %55 : vector<2x8x8xf32>
    %cst_30 = arith.constant dense<0.000000e+00> : vector<2x8xf32>
    %57 = vector.multi_reduction <add>, %56, %cst_30 [2] : vector<2x8x8xf32> to vector<2x8xf32>
    %58 = vector.shape_cast %57 : vector<2x8xf32> to vector<2x8x1xf32>
    %59 = tpu.reciprocal %58 {approx = true} : vector<2x8x1xf32> -> vector<2x8x1xf32>
    %60 = vector.broadcast %59 : vector<2x8x1xf32> to vector<2x8x8xf32>
    %61 = arith.mulf %56, %60 : vector<2x8x8xf32>
    "tpu.trace_start"() <{level = 10 : i32, message = "bqk,bkd->bqd"}> : () -> ()
    %cst_31 = arith.constant dense<0.000000e+00> : vector<2x8x16xf32>
    %62 = tpu.matmul %61, %46, %cst_31 {dimension_numbers = #tpu.dot_dimension_numbers<[2], [1], [1], [2], [0, 0, 0, 1, 1, 2], [0], [0]>} : vector<2x8x8xf32>, vector<2x8x16xf32>, vector<2x8x16xf32> -> vector<2x8x16xf32>
    "tpu.trace_stop"() : () -> ()
    %63 = vector.shape_cast %62 : vector<2x8x16xf32> to vector<16x16xf32>
    %64 = vector.extract_strided_slice %42 {offsets = [0, 0], sizes = [16, 32], strides = [1, 1]} : vector<32x32xf32> to vector<16x32xf32>
    %cst_32 = arith.constant dense<0.000000e+00> : vector<16x32xf32>
    %65 = tpu.matmul %63, %64, %cst_32 {dimension_numbers = #tpu.dot_dimension_numbers<[1], [0], [0], [1], [0, 0, 1, 1], [], []>} : vector<16x16xf32>, vector<16x32xf32>, vector<16x32xf32> -> vector<16x32xf32>
    %66 = arith.addf %43, %65 : vector<16x32xf32>
    %67 = vector.extract_strided_slice %38 {offsets = [0, 0, 16], sizes = [2, 8, 16], strides = [1, 1, 1]} : vector<2x8x32xf32> to vector<2x8x16xf32>
    %68 = vector.extract_strided_slice %39 {offsets = [0, 0, 16], sizes = [2, 8, 16], strides = [1, 1, 1]} : vector<2x8x32xf32> to vector<2x8x16xf32>
    %69 = vector.extract_strided_slice %40 {offsets = [0, 0, 16], sizes = [2, 8, 16], strides = [1, 1, 1]} : vector<2x8x32xf32> to vector<2x8x16xf32>
    "tpu.trace_start"() <{level = 10 : i32, message = "bqd,bkd->bqk"}> : () -> ()
    %cst_33 = arith.constant dense<0.000000e+00> : vector<2x8x8xf32>
    %70 = tpu.matmul %67, %68, %cst_33 {dimension_numbers = #tpu.dot_dimension_numbers<[2], [2], [1], [1], [0, 0, 0, 1, 1, 1], [0], [0]>} : vector<2x8x16xf32>, vector<2x8x16xf32>, vector<2x8x8xf32> -> vector<2x8x8xf32>
    "tpu.trace_stop"() : () -> ()
    %cst_34 = arith.constant 2.500000e-01 : f32
    %71 = vector.broadcast %cst_34 : f32 to vector<2x8x8xf32>
    %72 = arith.mulf %70, %71 : vector<2x8x8xf32>
    %73 = vector.broadcast %0 : vector<2x1x8xf32> to vector<2x8x8xf32>
    %74 = arith.addf %72, %73 : vector<2x8x8xf32>
    %cst_35 = arith.constant dense<0xFF800000> : vector<2x8xf32>
    %75 = vector.multi_reduction <maximumf>, %74, %cst_35 [2] : vector<2x8x8xf32> to vector<2x8xf32>
    %76 = vector.shape_cast %75 : vector<2x8xf32> to vector<2x8x1xf32>
    %77 = vector.broadcast %76 : vector<2x8x1xf32> to vector<2x8x8xf32>
    %78 = arith.subf %74, %77 : vector<2x8x8xf32>
    %79 = math.exp %78 : vector<2x8x8xf32>
    %cst_36 = arith.constant dense<0.000000e+00> : vector<2x8xf32>
    %80 = vector.multi_reduction <add>, %79, %cst_36 [2] : vector<2x8x8xf32> to vector<2x8xf32>
    %81 = vector.shape_cast %80 : vector<2x8xf32> to vector<2x8x1xf32>
    %82 = tpu.reciprocal %81 {approx = true} : vector<2x8x1xf32> -> vector<2x8x1xf32>
    %83 = vector.broadcast %82 : vector<2x8x1xf32> to vector<2x8x8xf32>
    %84 = arith.mulf %79, %83 : vector<2x8x8xf32>
    "tpu.trace_start"() <{level = 10 : i32, message = "bqk,bkd->bqd"}> : () -> ()
    %cst_37 = arith.constant dense<0.000000e+00> : vector<2x8x16xf32>
    %85 = tpu.matmul %84, %69, %cst_37 {dimension_numbers = #tpu.dot_dimension_numbers<[2], [1], [1], [2], [0, 0, 0, 1, 1, 2], [0], [0]>} : vector<2x8x8xf32>, vector<2x8x16xf32>, vector<2x8x16xf32> -> vector<2x8x16xf32>
    "tpu.trace_stop"() : () -> ()
    %86 = vector.shape_cast %85 : vector<2x8x16xf32> to vector<16x16xf32>
    %87 = vector.extract_strided_slice %42 {offsets = [16, 0], sizes = [16, 32], strides = [1, 1]} : vector<32x32xf32> to vector<16x32xf32>
    %cst_38 = arith.constant dense<0.000000e+00> : vector<16x32xf32>
    %88 = tpu.matmul %86, %87, %cst_38 {dimension_numbers = #tpu.dot_dimension_numbers<[1], [0], [0], [1], [0, 0, 1, 1], [], []>} : vector<16x16xf32>, vector<16x32xf32>, vector<16x32xf32> -> vector<16x32xf32>
    %89 = arith.addf %66, %88 : vector<16x32xf32>
    %c0_39 = arith.constant 0 : index
    %c0_40 = arith.constant 0 : index
    %c0_41 = arith.constant 0 : index
    %90 = vector.load %arg7[%c0_39, %c0_40, %c0_41] : memref<2x1x32xf32, #tpu.memory_space<vmem>>, vector<1x1x32xf32>
    %91 = vector.shape_cast %90 : vector<1x1x32xf32> to vector<1x32xf32>
    %92 = vector.broadcast %91 : vector<1x32xf32> to vector<16x32xf32>
    %93 = arith.addf %89, %92 : vector<16x32xf32>
    %94 = arith.addf %25, %93 : vector<16x32xf32>
    %c0_42 = arith.constant 0 : index
    %c0_43 = arith.constant 0 : index
    %c0_44 = arith.constant 0 : index
    %95 = vector.load %arg8[%c0_42, %c0_43, %c0_44] : memref<2x1x32xf32, #tpu.memory_space<vmem>>, vector<1x1x32xf32>
    %96 = vector.shape_cast %95 : vector<1x1x32xf32> to vector<1x32xf32>
    %c0_45 = arith.constant 0 : index
    %c0_46 = arith.constant 0 : index
    %c0_47 = arith.constant 0 : index
    %97 = vector.load %arg9[%c0_45, %c0_46, %c0_47] : memref<2x1x32xf32, #tpu.memory_space<vmem>>, vector<1x1x32xf32>
    %98 = vector.shape_cast %97 : vector<1x1x32xf32> to vector<1x32xf32>
    %cst_48 = arith.constant dense<0.000000e+00> : vector<16xf32>
    %99 = vector.multi_reduction <add>, %94, %cst_48 [1] : vector<16x32xf32> to vector<16xf32>
    %100 = vector.shape_cast %99 : vector<16xf32> to vector<16x1xf32>
    %cst_49 = arith.constant 3.200000e+01 : f32
    %101 = vector.broadcast %cst_49 : f32 to vector<16x1xf32>
    %102 = arith.divf %100, %101 : vector<16x1xf32>
    %103 = vector.broadcast %102 : vector<16x1xf32> to vector<16x32xf32>
    %104 = arith.subf %94, %103 : vector<16x32xf32>
    %105 = arith.mulf %104, %104 : vector<16x32xf32>
    %cst_50 = arith.constant dense<0.000000e+00> : vector<16xf32>
    %106 = vector.multi_reduction <add>, %105, %cst_50 [1] : vector<16x32xf32> to vector<16xf32>
    %107 = vector.shape_cast %106 : vector<16xf32> to vector<16x1xf32>
    %cst_51 = arith.constant 3.200000e+01 : f32
    %108 = vector.broadcast %cst_51 : f32 to vector<16x1xf32>
    %109 = arith.divf %107, %108 : vector<16x1xf32>
    %cst_52 = arith.constant 9.99999996E-13 : f32
    %110 = vector.broadcast %cst_52 : f32 to vector<16x1xf32>
    %111 = arith.addf %109, %110 : vector<16x1xf32>
    %112 = math.rsqrt %111 : vector<16x1xf32>
    %113 = vector.broadcast %102 : vector<16x1xf32> to vector<16x32xf32>
    %114 = arith.subf %94, %113 : vector<16x32xf32>
    %115 = vector.broadcast %112 : vector<16x1xf32> to vector<16x32xf32>
    %116 = arith.mulf %114, %115 : vector<16x32xf32>
    %117 = vector.broadcast %96 : vector<1x32xf32> to vector<16x32xf32>
    %118 = arith.mulf %116, %117 : vector<16x32xf32>
    %119 = vector.broadcast %98 : vector<1x32xf32> to vector<16x32xf32>
    %120 = arith.addf %118, %119 : vector<16x32xf32>
    %c0_53 = arith.constant 0 : index
    %c0_54 = arith.constant 0 : index
    %c0_55 = arith.constant 0 : index
    %121 = vector.load %arg10[%c0_53, %c0_54, %c0_55] : memref<2x32x64xf32, #tpu.memory_space<vmem>>, vector<1x32x64xf32>
    %122 = vector.shape_cast %121 : vector<1x32x64xf32> to vector<32x64xf32>
    %cst_56 = arith.constant dense<0.000000e+00> : vector<16x64xf32>
    %123 = tpu.matmul %120, %122, %cst_56 {dimension_numbers = #tpu.dot_dimension_numbers<[1], [0], [0], [1], [0, 0, 1, 1], [], []>} : vector<16x32xf32>, vector<32x64xf32>, vector<16x64xf32> -> vector<16x64xf32>
    %c0_57 = arith.constant 0 : index
    %c0_58 = arith.constant 0 : index
    %c0_59 = arith.constant 0 : index
    %124 = vector.load %arg11[%c0_57, %c0_58, %c0_59] : memref<2x1x64xf32, #tpu.memory_space<vmem>>, vector<1x1x64xf32>
    %125 = vector.shape_cast %124 : vector<1x1x64xf32> to vector<1x64xf32>
    %126 = vector.broadcast %125 : vector<1x64xf32> to vector<16x64xf32>
    %127 = arith.addf %123, %126 : vector<16x64xf32>
    %cst_60 = arith.constant 5.000000e-01 : f32
    %128 = vector.broadcast %cst_60 : f32 to vector<16x64xf32>
    %129 = arith.mulf %128, %127 : vector<16x64xf32>
    %cst_61 = arith.constant 4.471500e-02 : f32
    %130 = vector.broadcast %cst_61 : f32 to vector<16x64xf32>
    %131 = arith.mulf %130, %127 : vector<16x64xf32>
    %132 = arith.mulf %131, %127 : vector<16x64xf32>
    %133 = arith.mulf %132, %127 : vector<16x64xf32>
    %134 = arith.addf %127, %133 : vector<16x64xf32>
    %cst_62 = arith.constant 0.797884583 : f32
    %135 = vector.broadcast %cst_62 : f32 to vector<16x64xf32>
    %136 = arith.mulf %135, %134 : vector<16x64xf32>
    %137 = math.tanh %136 : vector<16x64xf32>
    %cst_63 = arith.constant 1.000000e+00 : f32
    %138 = vector.broadcast %cst_63 : f32 to vector<16x64xf32>
    %139 = arith.addf %138, %137 : vector<16x64xf32>
    %140 = arith.mulf %129, %139 : vector<16x64xf32>
    %c0_64 = arith.constant 0 : index
    %c0_65 = arith.constant 0 : index
    %c0_66 = arith.constant 0 : index
    %141 = vector.load %arg12[%c0_64, %c0_65, %c0_66] : memref<2x64x32xf32, #tpu.memory_space<vmem>>, vector<1x64x32xf32>
    %142 = vector.shape_cast %141 : vector<1x64x32xf32> to vector<64x32xf32>
    %cst_67 = arith.constant dense<0.000000e+00> : vector<16x32xf32>
    %143 = tpu.matmul %140, %142, %cst_67 {dimension_numbers = #tpu.dot_dimension_numbers<[1], [0], [0], [1], [0, 0, 1, 1], [], []>} : vector<16x64xf32>, vector<64x32xf32>, vector<16x32xf32> -> vector<16x32xf32>
    %c0_68 = arith.constant 0 : index
    %c0_69 = arith.constant 0 : index
    %c0_70 = arith.constant 0 : index
    %144 = vector.load %arg13[%c0_68, %c0_69, %c0_70] : memref<2x1x32xf32, #tpu.memory_space<vmem>>, vector<1x1x32xf32>
    %145 = vector.shape_cast %144 : vector<1x1x32xf32> to vector<1x32xf32>
    %146 = vector.broadcast %145 : vector<1x32xf32> to vector<16x32xf32>
    %147 = arith.addf %143, %146 : vector<16x32xf32>
    %148 = arith.addf %120, %147 : vector<16x32xf32>
    %c0_71 = arith.constant 0 : index
    %c0_72 = arith.constant 0 : index
    %c0_73 = arith.constant 0 : index
    %149 = vector.load %arg14[%c0_71, %c0_72, %c0_73] : memref<2x1x32xf32, #tpu.memory_space<vmem>>, vector<1x1x32xf32>
    %150 = vector.shape_cast %149 : vector<1x1x32xf32> to vector<1x32xf32>
    %c0_74 = arith.constant 0 : index
    %c0_75 = arith.constant 0 : index
    %c0_76 = arith.constant 0 : index
    %151 = vector.load %arg15[%c0_74, %c0_75, %c0_76] : memref<2x1x32xf32, #tpu.memory_space<vmem>>, vector<1x1x32xf32>
    %152 = vector.shape_cast %151 : vector<1x1x32xf32> to vector<1x32xf32>
    %cst_77 = arith.constant dense<0.000000e+00> : vector<16xf32>
    %153 = vector.multi_reduction <add>, %148, %cst_77 [1] : vector<16x32xf32> to vector<16xf32>
    %154 = vector.shape_cast %153 : vector<16xf32> to vector<16x1xf32>
    %cst_78 = arith.constant 3.200000e+01 : f32
    %155 = vector.broadcast %cst_78 : f32 to vector<16x1xf32>
    %156 = arith.divf %154, %155 : vector<16x1xf32>
    %157 = vector.broadcast %156 : vector<16x1xf32> to vector<16x32xf32>
    %158 = arith.subf %148, %157 : vector<16x32xf32>
    %159 = arith.mulf %158, %158 : vector<16x32xf32>
    %cst_79 = arith.constant dense<0.000000e+00> : vector<16xf32>
    %160 = vector.multi_reduction <add>, %159, %cst_79 [1] : vector<16x32xf32> to vector<16xf32>
    %161 = vector.shape_cast %160 : vector<16xf32> to vector<16x1xf32>
    %cst_80 = arith.constant 3.200000e+01 : f32
    %162 = vector.broadcast %cst_80 : f32 to vector<16x1xf32>
    %163 = arith.divf %161, %162 : vector<16x1xf32>
    %cst_81 = arith.constant 9.99999996E-13 : f32
    %164 = vector.broadcast %cst_81 : f32 to vector<16x1xf32>
    %165 = arith.addf %163, %164 : vector<16x1xf32>
    %166 = math.rsqrt %165 : vector<16x1xf32>
    %167 = vector.broadcast %156 : vector<16x1xf32> to vector<16x32xf32>
    %168 = arith.subf %148, %167 : vector<16x32xf32>
    %169 = vector.broadcast %166 : vector<16x1xf32> to vector<16x32xf32>
    %170 = arith.mulf %168, %169 : vector<16x32xf32>
    %171 = vector.broadcast %150 : vector<1x32xf32> to vector<16x32xf32>
    %172 = arith.mulf %170, %171 : vector<16x32xf32>
    %173 = vector.broadcast %152 : vector<1x32xf32> to vector<16x32xf32>
    %174 = arith.addf %172, %173 : vector<16x32xf32>
    %175 = vector.shape_cast %174 : vector<16x32xf32> to vector<2x8x32xf32>
    %c1 = arith.constant 1 : index
    %c0_82 = arith.constant 0 : index
    %c0_83 = arith.constant 0 : index
    %c0_84 = arith.constant 0 : index
    %176 = vector.load %arg18[%c1, %c0_82, %c0_83, %c0_84] : memref<3x2x8x32xf32, #tpu.memory_space<vmem>>, vector<1x2x8x32xf32>
    %177 = vector.shape_cast %176 : vector<1x2x8x32xf32> to vector<2x8x32xf32>
    %178 = vector.shape_cast %175 : vector<2x8x32xf32> to vector<1x2x8x32xf32>
    tpu.vector_store %arg18[%c1, %c0_82, %c0_83, %c0_84], %178 {strides = array<i32>} : memref<3x2x8x32xf32, #tpu.memory_space<vmem>>, vector<1x2x8x32xf32>,
    %c1_85 = arith.constant 1 : index
    %c0_86 = arith.constant 0 : index
    %c0_87 = arith.constant 0 : index
    %179 = vector.load %arg4[%c1_85, %c0_86, %c0_87] : memref<2x32x96xf32, #tpu.memory_space<vmem>>, vector<1x32x96xf32>
    %180 = vector.shape_cast %179 : vector<1x32x96xf32> to vector<32x96xf32>
    %cst_88 = arith.constant dense<0.000000e+00> : vector<16x96xf32>
    %181 = tpu.matmul %174, %180, %cst_88 {dimension_numbers = #tpu.dot_dimension_numbers<[1], [0], [0], [1], [0, 0, 1, 1], [], []>} : vector<16x32xf32>, vector<32x96xf32>, vector<16x96xf32> -> vector<16x96xf32>
    %c1_89 = arith.constant 1 : index
    %c0_90 = arith.constant 0 : index
    %c0_91 = arith.constant 0 : index
    %182 = vector.load %arg5[%c1_89, %c0_90, %c0_91] : memref<2x1x96xf32, #tpu.memory_space<vmem>>, vector<1x1x96xf32>
    %183 = vector.shape_cast %182 : vector<1x1x96xf32> to vector<1x96xf32>
    %184 = vector.broadcast %183 : vector<1x96xf32> to vector<16x96xf32>
    %185 = arith.addf %181, %184 : vector<16x96xf32>
    %186 = vector.shape_cast %185 : vector<16x96xf32> to vector<2x8x96xf32>
    %187 = vector.extract_strided_slice %186 {offsets = [0, 0, 0], sizes = [2, 8, 32], strides = [1, 1, 1]} : vector<2x8x96xf32> to vector<2x8x32xf32>
    %188 = vector.extract_strided_slice %186 {offsets = [0, 0, 32], sizes = [2, 8, 32], strides = [1, 1, 1]} : vector<2x8x96xf32> to vector<2x8x32xf32>
    %189 = vector.extract_strided_slice %186 {offsets = [0, 0, 64], sizes = [2, 8, 32], strides = [1, 1, 1]} : vector<2x8x96xf32> to vector<2x8x32xf32>
    %c1_92 = arith.constant 1 : index
    %c0_93 = arith.constant 0 : index
    %c0_94 = arith.constant 0 : index
    %190 = vector.load %arg6[%c1_92, %c0_93, %c0_94] : memref<2x32x32xf32, #tpu.memory_space<vmem>>, vector<1x32x32xf32>
    %191 = vector.shape_cast %190 : vector<1x32x32xf32> to vector<32x32xf32>
    %cst_95 = arith.constant 0.000000e+00 : f32
    %192 = vector.broadcast %cst_95 : f32 to vector<16x32xf32>
    %193 = vector.extract_strided_slice %187 {offsets = [0, 0, 0], sizes = [2, 8, 16], strides = [1, 1, 1]} : vector<2x8x32xf32> to vector<2x8x16xf32>
    %194 = vector.extract_strided_slice %188 {offsets = [0, 0, 0], sizes = [2, 8, 16], strides = [1, 1, 1]} : vector<2x8x32xf32> to vector<2x8x16xf32>
    %195 = vector.extract_strided_slice %189 {offsets = [0, 0, 0], sizes = [2, 8, 16], strides = [1, 1, 1]} : vector<2x8x32xf32> to vector<2x8x16xf32>
    "tpu.trace_start"() <{level = 10 : i32, message = "bqd,bkd->bqk"}> : () -> ()
    %cst_96 = arith.constant dense<0.000000e+00> : vector<2x8x8xf32>
    %196 = tpu.matmul %193, %194, %cst_96 {dimension_numbers = #tpu.dot_dimension_numbers<[2], [2], [1], [1], [0, 0, 0, 1, 1, 1], [0], [0]>} : vector<2x8x16xf32>, vector<2x8x16xf32>, vector<2x8x8xf32> -> vector<2x8x8xf32>
    "tpu.trace_stop"() : () -> ()
    %cst_97 = arith.constant 2.500000e-01 : f32
    %197 = vector.broadcast %cst_97 : f32 to vector<2x8x8xf32>
    %198 = arith.mulf %196, %197 : vector<2x8x8xf32>
    %199 = vector.broadcast %0 : vector<2x1x8xf32> to vector<2x8x8xf32>
    %200 = arith.addf %198, %199 : vector<2x8x8xf32>
    %cst_98 = arith.constant dense<0xFF800000> : vector<2x8xf32>
    %201 = vector.multi_reduction <maximumf>, %200, %cst_98 [2] : vector<2x8x8xf32> to vector<2x8xf32>
    %202 = vector.shape_cast %201 : vector<2x8xf32> to vector<2x8x1xf32>
    %203 = vector.broadcast %202 : vector<2x8x1xf32> to vector<2x8x8xf32>
    %204 = arith.subf %200, %203 : vector<2x8x8xf32>
    %205 = math.exp %204 : vector<2x8x8xf32>
    %cst_99 = arith.constant dense<0.000000e+00> : vector<2x8xf32>
    %206 = vector.multi_reduction <add>, %205, %cst_99 [2] : vector<2x8x8xf32> to vector<2x8xf32>
    %207 = vector.shape_cast %206 : vector<2x8xf32> to vector<2x8x1xf32>
    %208 = tpu.reciprocal %207 {approx = true} : vector<2x8x1xf32> -> vector<2x8x1xf32>
    %209 = vector.broadcast %208 : vector<2x8x1xf32> to vector<2x8x8xf32>
    %210 = arith.mulf %205, %209 : vector<2x8x8xf32>
    "tpu.trace_start"() <{level = 10 : i32, message = "bqk,bkd->bqd"}> : () -> ()
    %cst_100 = arith.constant dense<0.000000e+00> : vector<2x8x16xf32>
    %211 = tpu.matmul %210, %195, %cst_100 {dimension_numbers = #tpu.dot_dimension_numbers<[2], [1], [1], [2], [0, 0, 0, 1, 1, 2], [0], [0]>} : vector<2x8x8xf32>, vector<2x8x16xf32>, vector<2x8x16xf32> -> vector<2x8x16xf32>
    "tpu.trace_stop"() : () -> ()
    %212 = vector.shape_cast %211 : vector<2x8x16xf32> to vector<16x16xf32>
    %213 = vector.extract_strided_slice %191 {offsets = [0, 0], sizes = [16, 32], strides = [1, 1]} : vector<32x32xf32> to vector<16x32xf32>
    %cst_101 = arith.constant dense<0.000000e+00> : vector<16x32xf32>
    %214 = tpu.matmul %212, %213, %cst_101 {dimension_numbers = #tpu.dot_dimension_numbers<[1], [0], [0], [1], [0, 0, 1, 1], [], []>} : vector<16x16xf32>, vector<16x32xf32>, vector<16x32xf32> -> vector<16x32xf32>
    %215 = arith.addf %192, %214 : vector<16x32xf32>
    %216 = vector.extract_strided_slice %187 {offsets = [0, 0, 16], sizes = [2, 8, 16], strides = [1, 1, 1]} : vector<2x8x32xf32> to vector<2x8x16xf32>
    %217 = vector.extract_strided_slice %188 {offsets = [0, 0, 16], sizes = [2, 8, 16], strides = [1, 1, 1]} : vector<2x8x32xf32> to vector<2x8x16xf32>
    %218 = vector.extract_strided_slice %189 {offsets = [0, 0, 16], sizes = [2, 8, 16], strides = [1, 1, 1]} : vector<2x8x32xf32> to vector<2x8x16xf32>
    "tpu.trace_start"() <{level = 10 : i32, message = "bqd,bkd->bqk"}> : () -> ()
    %cst_102 = arith.constant dense<0.000000e+00> : vector<2x8x8xf32>
    %219 = tpu.matmul %216, %217, %cst_102 {dimension_numbers = #tpu.dot_dimension_numbers<[2], [2], [1], [1], [0, 0, 0, 1, 1, 1], [0], [0]>} : vector<2x8x16xf32>, vector<2x8x16xf32>, vector<2x8x8xf32> -> vector<2x8x8xf32>
    "tpu.trace_stop"() : () -> ()
    %cst_103 = arith.constant 2.500000e-01 : f32
    %220 = vector.broadcast %cst_103 : f32 to vector<2x8x8xf32>
    %221 = arith.mulf %219, %220 : vector<2x8x8xf32>
    %222 = vector.broadcast %0 : vector<2x1x8xf32> to vector<2x8x8xf32>
    %223 = arith.addf %221, %222 : vector<2x8x8xf32>
    %cst_104 = arith.constant dense<0xFF800000> : vector<2x8xf32>
    %224 = vector.multi_reduction <maximumf>, %223, %cst_104 [2] : vector<2x8x8xf32> to vector<2x8xf32>
    %225 = vector.shape_cast %224 : vector<2x8xf32> to vector<2x8x1xf32>
    %226 = vector.broadcast %225 : vector<2x8x1xf32> to vector<2x8x8xf32>
    %227 = arith.subf %223, %226 : vector<2x8x8xf32>
    %228 = math.exp %227 : vector<2x8x8xf32>
    %cst_105 = arith.constant dense<0.000000e+00> : vector<2x8xf32>
    %229 = vector.multi_reduction <add>, %228, %cst_105 [2] : vector<2x8x8xf32> to vector<2x8xf32>
    %230 = vector.shape_cast %229 : vector<2x8xf32> to vector<2x8x1xf32>
    %231 = tpu.reciprocal %230 {approx = true} : vector<2x8x1xf32> -> vector<2x8x1xf32>
    %232 = vector.broadcast %231 : vector<2x8x1xf32> to vector<2x8x8xf32>
    %233 = arith.mulf %228, %232 : vector<2x8x8xf32>
    "tpu.trace_start"() <{level = 10 : i32, message = "bqk,bkd->bqd"}> : () -> ()
    %cst_106 = arith.constant dense<0.000000e+00> : vector<2x8x16xf32>
    %234 = tpu.matmul %233, %218, %cst_106 {dimension_numbers = #tpu.dot_dimension_numbers<[2], [1], [1], [2], [0, 0, 0, 1, 1, 2], [0], [0]>} : vector<2x8x8xf32>, vector<2x8x16xf32>, vector<2x8x16xf32> -> vector<2x8x16xf32>
    "tpu.trace_stop"() : () -> ()
    %235 = vector.shape_cast %234 : vector<2x8x16xf32> to vector<16x16xf32>
    %236 = vector.extract_strided_slice %191 {offsets = [16, 0], sizes = [16, 32], strides = [1, 1]} : vector<32x32xf32> to vector<16x32xf32>
    %cst_107 = arith.constant dense<0.000000e+00> : vector<16x32xf32>
    %237 = tpu.matmul %235, %236, %cst_107 {dimension_numbers = #tpu.dot_dimension_numbers<[1], [0], [0], [1], [0, 0, 1, 1], [], []>} : vector<16x16xf32>, vector<16x32xf32>, vector<16x32xf32> -> vector<16x32xf32>
    %238 = arith.addf %215, %237 : vector<16x32xf32>
    %c1_108 = arith.constant 1 : index
    %c0_109 = arith.constant 0 : index
    %c0_110 = arith.constant 0 : index
    %239 = vector.load %arg7[%c1_108, %c0_109, %c0_110] : memref<2x1x32xf32, #tpu.memory_space<vmem>>, vector<1x1x32xf32>
    %240 = vector.shape_cast %239 : vector<1x1x32xf32> to vector<1x32xf32>
    %241 = vector.broadcast %240 : vector<1x32xf32> to vector<16x32xf32>
    %242 = arith.addf %238, %241 : vector<16x32xf32>
    %243 = arith.addf %174, %242 : vector<16x32xf32>
    %c1_111 = arith.constant 1 : index
    %c0_112 = arith.constant 0 : index
    %c0_113 = arith.constant 0 : index
    %244 = vector.load %arg8[%c1_111, %c0_112, %c0_113] : memref<2x1x32xf32, #tpu.memory_space<vmem>>, vector<1x1x32xf32>
    %245 = vector.shape_cast %244 : vector<1x1x32xf32> to vector<1x32xf32>
    %c1_114 = arith.constant 1 : index
    %c0_115 = arith.constant 0 : index
    %c0_116 = arith.constant 0 : index
    %246 = vector.load %arg9[%c1_114, %c0_115, %c0_116] : memref<2x1x32xf32, #tpu.memory_space<vmem>>, vector<1x1x32xf32>
    %247 = vector.shape_cast %246 : vector<1x1x32xf32> to vector<1x32xf32>
    %cst_117 = arith.constant dense<0.000000e+00> : vector<16xf32>
    %248 = vector.multi_reduction <add>, %243, %cst_117 [1] : vector<16x32xf32> to vector<16xf32>
    %249 = vector.shape_cast %248 : vector<16xf32> to vector<16x1xf32>
    %cst_118 = arith.constant 3.200000e+01 : f32
    %250 = vector.broadcast %cst_118 : f32 to vector<16x1xf32>
    %251 = arith.divf %249, %250 : vector<16x1xf32>
    %252 = vector.broadcast %251 : vector<16x1xf32> to vector<16x32xf32>
    %253 = arith.subf %243, %252 : vector<16x32xf32>
    %254 = arith.mulf %253, %253 : vector<16x32xf32>
    %cst_119 = arith.constant dense<0.000000e+00> : vector<16xf32>
    %255 = vector.multi_reduction <add>, %254, %cst_119 [1] : vector<16x32xf32> to vector<16xf32>
    %256 = vector.shape_cast %255 : vector<16xf32> to vector<16x1xf32>
    %cst_120 = arith.constant 3.200000e+01 : f32
    %257 = vector.broadcast %cst_120 : f32 to vector<16x1xf32>
    %258 = arith.divf %256, %257 : vector<16x1xf32>
    %cst_121 = arith.constant 9.99999996E-13 : f32
    %259 = vector.broadcast %cst_121 : f32 to vector<16x1xf32>
    %260 = arith.addf %258, %259 : vector<16x1xf32>
    %261 = math.rsqrt %260 : vector<16x1xf32>
    %262 = vector.broadcast %251 : vector<16x1xf32> to vector<16x32xf32>
    %263 = arith.subf %243, %262 : vector<16x32xf32>
    %264 = vector.broadcast %261 : vector<16x1xf32> to vector<16x32xf32>
    %265 = arith.mulf %263, %264 : vector<16x32xf32>
    %266 = vector.broadcast %245 : vector<1x32xf32> to vector<16x32xf32>
    %267 = arith.mulf %265, %266 : vector<16x32xf32>
    %268 = vector.broadcast %247 : vector<1x32xf32> to vector<16x32xf32>
    %269 = arith.addf %267, %268 : vector<16x32xf32>
    %c1_122 = arith.constant 1 : index
    %c0_123 = arith.constant 0 : index
    %c0_124 = arith.constant 0 : index
    %270 = vector.load %arg10[%c1_122, %c0_123, %c0_124] : memref<2x32x64xf32, #tpu.memory_space<vmem>>, vector<1x32x64xf32>
    %271 = vector.shape_cast %270 : vector<1x32x64xf32> to vector<32x64xf32>
    %cst_125 = arith.constant dense<0.000000e+00> : vector<16x64xf32>
    %272 = tpu.matmul %269, %271, %cst_125 {dimension_numbers = #tpu.dot_dimension_numbers<[1], [0], [0], [1], [0, 0, 1, 1], [], []>} : vector<16x32xf32>, vector<32x64xf32>, vector<16x64xf32> -> vector<16x64xf32>
    %c1_126 = arith.constant 1 : index
    %c0_127 = arith.constant 0 : index
    %c0_128 = arith.constant 0 : index
    %273 = vector.load %arg11[%c1_126, %c0_127, %c0_128] : memref<2x1x64xf32, #tpu.memory_space<vmem>>, vector<1x1x64xf32>
    %274 = vector.shape_cast %273 : vector<1x1x64xf32> to vector<1x64xf32>
    %275 = vector.broadcast %274 : vector<1x64xf32> to vector<16x64xf32>
    %276 = arith.addf %272, %275 : vector<16x64xf32>
    %cst_129 = arith.constant 5.000000e-01 : f32
    %277 = vector.broadcast %cst_129 : f32 to vector<16x64xf32>
    %278 = arith.mulf %277, %276 : vector<16x64xf32>
    %cst_130 = arith.constant 4.471500e-02 : f32
    %279 = vector.broadcast %cst_130 : f32 to vector<16x64xf32>
    %280 = arith.mulf %279, %276 : vector<16x64xf32>
    %281 = arith.mulf %280, %276 : vector<16x64xf32>
    %282 = arith.mulf %281, %276 : vector<16x64xf32>
    %283 = arith.addf %276, %282 : vector<16x64xf32>
    %cst_131 = arith.constant 0.797884583 : f32
    %284 = vector.broadcast %cst_131 : f32 to vector<16x64xf32>
    %285 = arith.mulf %284, %283 : vector<16x64xf32>
    %286 = math.tanh %285 : vector<16x64xf32>
    %cst_132 = arith.constant 1.000000e+00 : f32
    %287 = vector.broadcast %cst_132 : f32 to vector<16x64xf32>
    %288 = arith.addf %287, %286 : vector<16x64xf32>
    %289 = arith.mulf %278, %288 : vector<16x64xf32>
    %c1_133 = arith.constant 1 : index
    %c0_134 = arith.constant 0 : index
    %c0_135 = arith.constant 0 : index
    %290 = vector.load %arg12[%c1_133, %c0_134, %c0_135] : memref<2x64x32xf32, #tpu.memory_space<vmem>>, vector<1x64x32xf32>
    %291 = vector.shape_cast %290 : vector<1x64x32xf32> to vector<64x32xf32>
    %cst_136 = arith.constant dense<0.000000e+00> : vector<16x32xf32>
    %292 = tpu.matmul %289, %291, %cst_136 {dimension_numbers = #tpu.dot_dimension_numbers<[1], [0], [0], [1], [0, 0, 1, 1], [], []>} : vector<16x64xf32>, vector<64x32xf32>, vector<16x32xf32> -> vector<16x32xf32>
    %c1_137 = arith.constant 1 : index
    %c0_138 = arith.constant 0 : index
    %c0_139 = arith.constant 0 : index
    %293 = vector.load %arg13[%c1_137, %c0_138, %c0_139] : memref<2x1x32xf32, #tpu.memory_space<vmem>>, vector<1x1x32xf32>
    %294 = vector.shape_cast %293 : vector<1x1x32xf32> to vector<1x32xf32>
    %295 = vector.broadcast %294 : vector<1x32xf32> to vector<16x32xf32>
    %296 = arith.addf %292, %295 : vector<16x32xf32>
    %297 = arith.addf %269, %296 : vector<16x32xf32>
    %c1_140 = arith.constant 1 : index
    %c0_141 = arith.constant 0 : index
    %c0_142 = arith.constant 0 : index
    %298 = vector.load %arg14[%c1_140, %c0_141, %c0_142] : memref<2x1x32xf32, #tpu.memory_space<vmem>>, vector<1x1x32xf32>
    %299 = vector.shape_cast %298 : vector<1x1x32xf32> to vector<1x32xf32>
    %c1_143 = arith.constant 1 : index
    %c0_144 = arith.constant 0 : index
    %c0_145 = arith.constant 0 : index
    %300 = vector.load %arg15[%c1_143, %c0_144, %c0_145] : memref<2x1x32xf32, #tpu.memory_space<vmem>>, vector<1x1x32xf32>
    %301 = vector.shape_cast %300 : vector<1x1x32xf32> to vector<1x32xf32>
    %cst_146 = arith.constant dense<0.000000e+00> : vector<16xf32>
    %302 = vector.multi_reduction <add>, %297, %cst_146 [1] : vector<16x32xf32> to vector<16xf32>
    %303 = vector.shape_cast %302 : vector<16xf32> to vector<16x1xf32>
    %cst_147 = arith.constant 3.200000e+01 : f32
    %304 = vector.broadcast %cst_147 : f32 to vector<16x1xf32>
    %305 = arith.divf %303, %304 : vector<16x1xf32>
    %306 = vector.broadcast %305 : vector<16x1xf32> to vector<16x32xf32>
    %307 = arith.subf %297, %306 : vector<16x32xf32>
    %308 = arith.mulf %307, %307 : vector<16x32xf32>
    %cst_148 = arith.constant dense<0.000000e+00> : vector<16xf32>
    %309 = vector.multi_reduction <add>, %308, %cst_148 [1] : vector<16x32xf32> to vector<16xf32>
    %310 = vector.shape_cast %309 : vector<16xf32> to vector<16x1xf32>
    %cst_149 = arith.constant 3.200000e+01 : f32
    %311 = vector.broadcast %cst_149 : f32 to vector<16x1xf32>
    %312 = arith.divf %310, %311 : vector<16x1xf32>
    %cst_150 = arith.constant 9.99999996E-13 : f32
    %313 = vector.broadcast %cst_150 : f32 to vector<16x1xf32>
    %314 = arith.addf %312, %313 : vector<16x1xf32>
    %315 = math.rsqrt %314 : vector<16x1xf32>
    %316 = vector.broadcast %305 : vector<16x1xf32> to vector<16x32xf32>
    %317 = arith.subf %297, %316 : vector<16x32xf32>
    %318 = vector.broadcast %315 : vector<16x1xf32> to vector<16x32xf32>
    %319 = arith.mulf %317, %318 : vector<16x32xf32>
    %320 = vector.broadcast %299 : vector<1x32xf32> to vector<16x32xf32>
    %321 = arith.mulf %319, %320 : vector<16x32xf32>
    %322 = vector.broadcast %301 : vector<1x32xf32> to vector<16x32xf32>
    %323 = arith.addf %321, %322 : vector<16x32xf32>
    %324 = vector.shape_cast %323 : vector<16x32xf32> to vector<2x8x32xf32>
    %c2 = arith.constant 2 : index
    %c0_151 = arith.constant 0 : index
    %c0_152 = arith.constant 0 : index
    %c0_153 = arith.constant 0 : index
    %325 = vector.load %arg18[%c2, %c0_151, %c0_152, %c0_153] : memref<3x2x8x32xf32, #tpu.memory_space<vmem>>, vector<1x2x8x32xf32>
    %326 = vector.shape_cast %325 : vector<1x2x8x32xf32> to vector<2x8x32xf32>
    %327 = vector.shape_cast %324 : vector<2x8x32xf32> to vector<1x2x8x32xf32>
    tpu.vector_store %arg18[%c2, %c0_151, %c0_152, %c0_153], %327 {strides = array<i32>} : memref<3x2x8x32xf32, #tpu.memory_space<vmem>>, vector<1x2x8x32xf32>,
    %328 = vector.extract_strided_slice %323 {offsets = [0, 0], sizes = [1, 32], strides = [1, 1]} : vector<16x32xf32> to vector<1x32xf32>
    %329 = vector.extract_strided_slice %323 {offsets = [8, 0], sizes = [1, 32], strides = [1, 1]} : vector<16x32xf32> to vector<1x32xf32>
    %330 = tpu.concatenate %328, %329 in 0 : vector<1x32xf32>, vector<1x32xf32> -> vector<2x32xf32>
    %c0_154 = arith.constant 0 : index
    %c0_155 = arith.constant 0 : index
    %331 = vector.load %arg16[%c0_154, %c0_155] : memref<32x32xf32, #tpu.memory_space<vmem>>, vector<32x32xf32>
    %cst_156 = arith.constant dense<0.000000e+00> : vector<2x32xf32>
    %332 = tpu.matmul %330, %331, %cst_156 {dimension_numbers = #tpu.dot_dimension_numbers<[1], [0], [0], [1], [0, 0, 1, 1], [], []>} : vector<2x32xf32>, vector<32x32xf32>, vector<2x32xf32> -> vector<2x32xf32>
    %c0_157 = arith.constant 0 : index
    %c0_158 = arith.constant 0 : index
    %333 = vector.load %arg17[%c0_157, %c0_158] : memref<1x32xf32, #tpu.memory_space<vmem>>, vector<1x32xf32>
    %334 = vector.broadcast %333 : vector<1x32xf32> to vector<2x32xf32>
    %335 = arith.addf %332, %334 : vector<2x32xf32>
    %336 = math.tanh %335 : vector<2x32xf32>
    %c0_159 = arith.constant 0 : index
    %c0_160 = arith.constant 0 : index
    %337 = vector.load %arg19[%c0_159, %c0_160] : memref<2x32xf32, #tpu.memory_space<vmem>>, vector<2x32xf32>
    tpu.vector_store %arg19[%c0_159, %c0_160], %336 {strides = array<i32>} : memref<2x32xf32, #tpu.memory_space<vmem>>, vector<2x32xf32>,
    return
  }
}

</mosaic_0001>

<bundles_post_ra>
// kernel: word_encoder_forward.1
= control target key start
LH: loop header
LB: loop body
LE: loop exit
PB: predicated region body
PF: predicated region fallthrough
CT: control target
= control target key end

     0   :  { %s3770_s0 = inlined_call_operand.vmem [shape: f32[16,32], index: 0, kind: input, shape index: {}]   ;;  %s3771_s1 = inlined_call_operand.vmem [shape: f32[2,1,8], index: 1, kind: input, shape index: {}]   ;;  %s3772_s2 = inlined_call_operand.vmem [shape: f32[1,32], index: 2, kind: input, shape index: {}]   ;;  %s3773_s3 = inlined_call_operand.vmem [shape: f32[1,32], index: 3, kind: input, shape index: {}]   ;;  %s3774_s4 = inlined_call_operand.vmem [shape: f32[2,32,96], index: 4, kind: input, shape index: {}]   ;;  %s3775_s5 = inlined_call_operand.vmem [shape: f32[2,1,96], index: 5, kind: input, shape index: {}]   ;;  %s3776_s6 = inlined_call_operand.vmem [shape: f32[2,32,32], index: 6, kind: input, shape index: {}]   ;;  %s3777_s7 = inlined_call_operand.vmem [shape: f32[2,1,32], index: 7, kind: input, shape index: {}]   ;;  %s3778_s8 = inlined_call_operand.vmem [shape: f32[2,1,32], index: 8, kind: input, shape index: {}]   ;;  %s3779_s9 = inlined_call_operand.vmem [shape: f32[2,1,32], index: 9, kind: input, shape index: {}]   ;;  %s3780_s10 = inlined_call_operand.vmem [shape: f32[2,32,64], index: 10, kind: input, shape index: {}]   ;;  %s3781_s11 = inlined_call_operand.vmem [shape: f32[2,1,64], index: 11, kind: input, shape index: {}]   ;;  %s3782_s12 = inlined_call_operand.vmem [shape: f32[2,64,32], index: 12, kind: input, shape index: {}]   ;;  %s3783_s13 = inlined_call_operand.vmem [shape: f32[2,1,32], index: 13, kind: input, shape index: {}]   ;;  %s3784_s14 = inlined_call_operand.vmem [shape: f32[2,1,32], index: 14, kind: input, shape index: {}]   ;;  %s3785_s15 = inlined_call_operand.vmem [shape: f32[2,1,32], index: 15, kind: input, shape index: {}]   ;;  %s3786_s16 = inlined_call_operand.vmem [shape: f32[32,32], index: 16, kind: input, shape index: {}]   ;;  %s3787_s17 = inlined_call_operand.vmem [shape: f32[1,32], index: 17, kind: input, shape index: {}]   ;;  %s3788_s18 = inlined_call_operand.vmem [shape: f32[3,2,8,32], index: 18, kind: output, shape index: {0}]   ;;  %s3789_s19 = inlined_call_operand.hbm [shape: f32[2,32], index: 19, kind: output, shape index: {1}]  }
   0x1   :  { %3792 = sst [smem:[#allocation5_spill]] %s3770_s0 }
   0x2   :  { %3793 = sst [smem:[#allocation6_spill]] %s3771_s1 }
   0x3   :  { %3794 = sst [smem:[#allocation7_spill]] %s3772_s2 }
   0x4   :  { %3795 = sst [smem:[#allocation8_spill]] %s3773_s3 }
   0x5   :  { %s3796_s20 = sld [smem:[#allocation5_spill]]  ;;  %vm68_vm0 = vcmask 261120  }
   0xb   :  { %v64_v0 = vld [vmem:[%s3796_s20] sm:$0xff]  ;;  %v65_v1 = vld [vmem:[%s3796_s20 + $0x8] sm:$0xff] }
   0xc   :  { %25 = vsyncpa [#allocation3], 0  ;;  %v69_v2 = vsel %vm68_vm0, %v64_v0, 0.0  ;;  %v72_v3 = vsel %vm68_vm0, %v65_v1, 0.0  ;;  %v117_v14 = vld [vmem:[%s3774_s4 + $0x18] sm:$0xff]  ;;  %v116_v15 = vld [vmem:[%s3774_s4 + $0x10] sm:$0xff] }
   0xd   :  { %70 = vadd.xlane.f32.xlu0 %v69_v2  ;;  %2914 = vmatprep.subr.mxu0 %v117_v14  ;;  %v115_v16 = vld [vmem:[%s3774_s4 + $0x8] sm:$0xff]  ;;  %v114_v17 = vld [vmem:[%s3774_s4] sm:$0xff]  ;;  %s3797_s0 = sld [smem:[#allocation7_spill]]  ;;  %v3207_v34 = vmov 0.0   ;;  %vm3208_vm1 = vmmov 0   ;;  %s3209_s3 = smov 96  }
   0xe   :  { %2915 = vmatpush3.msra.mxu0 %v117_v14  ;;  %s3798_s21 = sld [smem:[#allocation8_spill]]  ;;  %2925 = vmatprep.subr.mxu1 %v3207_v34  ;;  %v2721_v35 = vld [vmem:[%s3775_s5] ss:$0 sm:$0xff]  ;;  %vm213_vm2 = vcmask 130048   ;;  %vm381_vm3 = vcmask 64512   ;;  %s3210_s30 = smov 64  }
   0xf   :  { %2916 = vmatprep.subr.mxu0 %v116_v15  ;;  %2927 = vmatprep.mubr.msk.f32.mxu1 %vm3208_vm1, %v3207_v34  ;;  %s3799_s28 = sld [smem:[#allocation6_spill]]  ;;  %s3211_s20 = smov 80   ;;  %vm1232_vm4 = vcmask 523264   ;;  %vm2612_vm5 = vcmask 1040384   ;;  %vm2699_vm6 = vcmask 254976  }
  0x10   :  { %2917 = vmatpush3.msra.mxu0 %v116_v15  ;;  %s3213_s1 = smov 48  }
  0x11   :  { %73 = vadd.xlane.f32.xlu0 %v72_v3  ;;  %2918 = vmatprep.subr.mxu0 %v115_v16 }
  0x12   :  { %2919 = vmatpush3.msra.mxu0 %v115_v16 }
  0x13   :  { %2920 = vmatprep.subr.mxu0 %v114_v17  ;;  %v2719_v25 = vld [vmem:[%s3797_s0] ss:$0 sm:$0xff] }
  0x14   :  { %2921 = vmatpush3.msra.mxu0 %v114_v17  ;;  %v2720_v27 = vld [vmem:[%s3798_s21] ss:$0 sm:$0xff]  ;;  %s3212_s21 = smov 112  }
  0x15   :  { %2935 = vmatprep.subr.mxu0 %v3207_v34  ;;  %v3393_v43 = vld [vmem:[%s3799_s28] ss:$0 sm:$0xff]  ;;  %v3399_v48 = vld [vmem:[%s3799_s28 + $0x1] ss:$0 sm:$0xff] }
  0x96   :  { %v71_v4 = vpop.xlane.xlu0 %70 }
  0x97   :  { %v76_v5 = vmul.f32 0.03125, %v71_v4 }
  0x99   :  { %v78_v6 = vsub.f32 %v64_v0, %v76_v5 }
  0x9a   :  { %v74_v7 = vpop.xlane.xlu0 %73 }
  0x9b   :  { %v77_v8 = vmul.f32 0.03125, %v74_v7  ;;  %v80_v9 = vmul.f32 %v78_v6, %v78_v6 }
  0x9d   :  { %v79_v10 = vsub.f32 %v65_v1, %v77_v8  ;;  %v82_v11 = vsel %vm68_vm0, %v80_v9, 0.0 }
  0x9e   :  { %83 = vadd.xlane.f32.xlu1 %v82_v11 }
  0x9f   :  { %v81_v12 = vmul.f32 %v79_v10, %v79_v10 }
  0xa1   :  { %v85_v13 = vsel %vm68_vm0, %v81_v12, 0.0 }
  0xa2   :  { %86 = vadd.xlane.f32.xlu1 %v85_v13 }
 0x127   :  { %v84_v18 = vpop.xlane.xlu1 %83 }
 0x128   :  { %v88_v19 = vmul.f32 0.03125, %v84_v18 }
 0x12a   :  { %v90_v20 = vadd.f32 1e-12, %v88_v19 }
 0x12b   :  { %v87_v21 = vpop.xlane.xlu1 %86 }
 0x12c   :  { %3123 = vrsqrt.f32 %v90_v20  ;;  %v89_v22 = vmul.f32 0.03125, %v87_v21 }
 0x12e   :  { %v91_v23 = vadd.f32 1e-12, %v89_v22 }
 0x130   :  { %3125 = vrsqrt.f32 %v91_v23 }
 0x139   :  { %v3124_v24 = vpop.eup %3123 }
 0x13a   :  { %v94_v26 = vmul.f32 %v3124_v24, %v78_v6 }
 0x13c   :  { %v102_v28 = vmul.f32 %v2719_v25, %v94_v26 }
 0x13d   :  { %v3126_v29 = vpop.eup %3125 }
 0x13e   :  { %v95_v30 = vmul.f32 %v3126_v29, %v79_v10  ;;  %v3343_v31 = vadd.f32 %v2720_v27, %v102_v28 }
 0x140   :  { %v103_v32 = vmul.f32 %v2719_v25, %v95_v30  ;;  %112 = vst.msk [vmem:[%s3788_s18] sm:$0xff] %vm68_vm0, %v3343_v31  ;;  %2922 = vmatprep.mubr.msk.f32.mxu0 %vm68_vm0, %v3343_v31 }
 0x142   :  { %v3352_v33 = vadd.f32 %v2720_v27, %v103_v32 }
 0x144   :  { %113 = vst.msk [vmem:[%s3788_s18 + $0x8] sm:$0xff] %vm68_vm0, %v3352_v33  ;;  %2923 = vmatmul.mubr.msk.f32.vlgmr.msra.gmra.mxu0 %vm68_vm0, %v3352_v33 }
 0x145   :  { %2937 = vmatprep.mubr.msk.f32.mxu0 %vm3208_vm1, %v3207_v34 }
 0x204   :  { %v2924_v36 = vpop.f32.mrf.mxu0 }
 0x205   :  { %v3370_v37 = vadd.f32 %v2924_v36, %v2721_v35 }
 0x206   :  { %v197_v38 = vpop.f32.mrf.mxu0 }
 0x207   :  { %v3372_v39 = vadd.f32 %v2721_v35, %v197_v38  ;;  %289 = vrot.lane.b32.xlu1 %v3370_v37, %s3209_s3 }
 0x209   :  { %211 = vrot.lane.b32.xlu0 %v3372_v39, %s3209_s3 }
 0x279   :  { %v290_v41 = vpop.permute.xlu1 %289 }
 0x27b   :  { %v212_v40 = vpop.permute.xlu0 %211 }
 0x27c   :  { %2926 = vmatpush3.xpose.msk.msra.mxu1 %vm213_vm2, %v212_v40 }
 0x27d   :  { %2930 = vmatprep.subr.mxu1 %v3207_v34 }
 0x27f   :  { %2928 = vmatmul.mubr.msk.f32.vlgmr.msra.gmra.mxu1 %vm213_vm2, %v3372_v39 }
 0x280   :  { %2931 = vmatpush3.xpose.msk.msra.mxu1 %vm213_vm2, %v290_v41  ;;  %2932 = vmatprep.mubr.msk.f32.mxu1 %vm3208_vm1, %v3207_v34 }
 0x281   :  { %2940 = vmatprep.subr.mxu1 %v3207_v34 }
 0x283   :  { %2933 = vmatmul.mubr.msk.f32.vlgmr.msra.gmra.mxu1 %vm213_vm2, %v3370_v37 }
 0x284   :  { %2942 = vmatprep.mubr.msk.f32.mxu1 %vm3208_vm1, %v3207_v34 }
 0x33f   :  { %v284_v42 = vpop.f32.mrf.mxu1 }
 0x340   :  { %v365_v44 = vmul.f32 0.25, %v284_v42 }
 0x341   :  { %v2929_v45 = vpop.f32.mrf.mxu1 }
 0x342   :  { %v379_v46 = vadd.f32 %v3393_v43, %v365_v44 }
 0x343   :  { %v361_v47 = vpop.f32.mrf.mxu1 }
 0x344   :  { %v366_v49 = vmul.f32 0.25, %v361_v47  ;;  %v382_v50 = vsel %vm381_vm3, %v379_v46, -inf }
 0x345   :  { %v2934_v51 = vpop.f32.mrf.mxu1  ;;  %383 = vmax.xlane.f32.xlu1 %v382_v50 }
 0x346   :  { %v380_v52 = vadd.f32 %v3399_v48, %v366_v49  ;;  %v209_v51 = vld [vmem:[%s3776_s6 + $0x18] sm:$0xff] }
 0x348   :  { %v385_v53 = vsel %vm381_vm3, %v380_v52, -inf }
 0x349   :  { %386 = vmax.xlane.f32.xlu0 %v385_v53 }
 0x356   :  { %480 = vrot.lane.b32.xlu1 %v3370_v37, %s3210_s30 }
 0x35a   :  { %558 = vrot.lane.b32.xlu1 %v3372_v39, %s3211_s20 }
 0x35e   :  { %636 = vrot.lane.b32.xlu1 %v3370_v37, %s3211_s20 }
 0x3ce   :  { %v384_v54 = vpop.xlane.xlu1 %383 }
 0x3cf   :  { %v388_v55 = vsub.f32 %v379_v46, %v384_v54 }
 0x3d1   :  { %v390_v56 = vmul.f32 1.442695, %v388_v55 }
 0x3d2   :  { %v387_v57 = vpop.xlane.xlu0 %386  ;;  %v481_v58 = vpop.permute.xlu1 %480 }
 0x3d3   :  { %3127 = vpow2.f32 %v390_v56  ;;  %v389_v59 = vsub.f32 %v380_v52, %v387_v57  ;;  %2941 = vmatpush3.msra.mxu1 %v481_v58  ;;  %v208_v52 = vld [vmem:[%s3776_s6 + $0x10] sm:$0xff] }
 0x3d4   :  { %2950 = vmatprep.subr.mxu1 %v3207_v34 }
 0x3d5   :  { %v392_v60 = vmul.f32 1.442695, %v389_v59  ;;  %v2742_v59 = vld [vmem:[%s3777_s7] ss:$0 sm:$0xff] }
 0x3d6   :  { %v559_v1 = vpop.permute.xlu1 %558 }
 0x3d7   :  { %3129 = vpow2.f32 %v392_v60 }
 0x3da   :  { %v637_v2 = vpop.permute.xlu1 %636 }
 0x3e0   :  { %v3128_v61 = vpop.eup %3127 }
 0x3e1   :  { %v394_v62 = vsel %vm381_vm3, %v3128_v61, 0.0 }
 0x3e2   :  { %395 = vadd.xlane.f32.xlu0 %v394_v62 }
 0x3e4   :  { %v3130_v63 = vpop.eup %3129 }
 0x3e5   :  { %v397_v0 = vsel %vm381_vm3, %v3130_v63, 0.0 }
 0x3e6   :  { %398 = vadd.xlane.f32.xlu1 %v397_v0 }
 0x3f7   :  { %634 = vrot.lane.b32.xlu1 %v3370_v37, %s3212_s21 }
 0x3f8   :  { %404 = vrot.lane.b32.xlu0 %v3372_v39, %s3210_s30 }
 0x3fc   :  { %556 = vrot.lane.b32.xlu0 %v3372_v39, %s3212_s21 }
 0x46b   :  { %v396_v3 = vpop.xlane.xlu0 %395 }
 0x46c   :  { %3131 = vrcp.f32 %v396_v3 }
 0x46f   :  { %v405_v4 = vpop.permute.xlu0 %404  ;;  %v399_v5 = vpop.xlane.xlu1 %398 }
 0x470   :  { %3133 = vrcp.f32 %v399_v5  ;;  %2936 = vmatpush3.msra.mxu0 %v405_v4 }
 0x471   :  { %2945 = vmatprep.subr.mxu0 %v3207_v34 }
 0x473   :  { %v557_v10 = vpop.permute.xlu0 %556  ;;  %v635_v11 = vpop.permute.xlu1 %634 }
 0x479   :  { %v3132_v6 = vpop.eup %3131 }
 0x47a   :  { %v402_v7 = vmul.f32 %v3132_v6, %v3128_v61 }
 0x47c   :  { %2938 = vmatmul.mubr.msk.f32.vlgmr.msra.gmra.mxu0 %vm381_vm3, %v402_v7 }
 0x47d   :  { %v3134_v8 = vpop.eup %3133  ;;  %2946 = vmatpush3.xpose.msk.msra.mxu0 %vm213_vm2, %v559_v1  ;;  %2947 = vmatprep.mubr.msk.f32.mxu0 %vm3208_vm1, %v3207_v34 }
 0x47e   :  { %v403_v9 = vmul.f32 %v3134_v8, %v3130_v63  ;;  %2955 = vmatprep.subr.mxu0 %v3207_v34 }
 0x480   :  { %2943 = vmatmul.mubr.msk.f32.vlgmr.msra.gmra.mxu1 %vm381_vm3, %v403_v9  ;;  %2948 = vmatmul.mubr.msk.f32.vlgmr.msra.gmra.mxu0 %vm213_vm2, %v557_v10 }
 0x481   :  { %2951 = vmatpush3.xpose.msk.msra.mxu1 %vm213_vm2, %v637_v2  ;;  %2952 = vmatprep.mubr.msk.f32.mxu1 %vm3208_vm1, %v3207_v34 }
 0x482   :  { %2960 = vmatprep.subr.mxu1 %v3207_v34  ;;  %2957 = vmatprep.mubr.msk.f32.mxu0 %vm3208_vm1, %v3207_v34 }
 0x484   :  { %2953 = vmatmul.mubr.msk.f32.vlgmr.msra.gmra.mxu1 %vm213_vm2, %v635_v11 }
 0x485   :  { %2962 = vmatprep.mubr.msk.f32.mxu1 %vm3208_vm1, %v3207_v34 }
 0x53c   :  { %v476_v12 = vpop.f32.mrf.mxu0 }
 0x53e   :  { %v2939_v13 = vpop.f32.mrf.mxu0 }
 0x540   :  { %v552_v14 = vpop.f32.mrf.mxu1  ;;  %v630_v15 = vpop.f32.mrf.mxu0 }
 0x541   :  { %v712_v16 = vmul.f32 0.25, %v630_v15  ;;  %v1109_v15 = vld [vmem:[%s3780_s10 + $0x10] sm:$0xff] }
 0x542   :  { %v2944_v17 = vpop.f32.mrf.mxu1  ;;  %v2949_v18 = vpop.f32.mrf.mxu0 }
 0x543   :  { %v714_v19 = vadd.f32 %v3393_v43, %v712_v16  ;;  %v1108_v16 = vld [vmem:[%s3780_s10 + $0x8] sm:$0xff]  ;;  %v1107_v17 = vld [vmem:[%s3780_s10] sm:$0xff] }
 0x544   :  { %v708_v20 = vpop.f32.mrf.mxu1 }
 0x545   :  { %v713_v21 = vmul.f32 0.25, %v708_v20  ;;  %v716_v22 = vsel %vm381_vm3, %v714_v19, -inf }
 0x546   :  { %717 = vmax.xlane.f32.xlu0 %v716_v22  ;;  %v2954_v23 = vpop.f32.mrf.mxu1 }
 0x547   :  { %v715_v24 = vadd.f32 %v3399_v48, %v713_v21 }
 0x549   :  { %v719_v25 = vsel %vm381_vm3, %v715_v24, -inf }
 0x54a   :  { %720 = vmax.xlane.f32.xlu1 %v719_v25  ;;  %v2743_v25 = vld [vmem:[%s3778_s8] ss:$0 sm:$0xff] }
 0x55b   :  { %814 = vrot.lane.b32.xlu1 %v3370_v37, %s3213_s1  ;;  %v207_v37 = vld [vmem:[%s3776_s6 + $0x8] sm:$0xff] }
 0x5cf   :  { %v718_v26 = vpop.xlane.xlu0 %717 }
 0x5d0   :  { %v722_v27 = vsub.f32 %v714_v19, %v718_v26 }
 0x5d2   :  { %v724_v28 = vmul.f32 1.442695, %v722_v27 }
 0x5d3   :  { %v721_v29 = vpop.xlane.xlu1 %720 }
 0x5d4   :  { %3135 = vpow2.f32 %v724_v28  ;;  %v723_v30 = vsub.f32 %v715_v24, %v721_v29 }
 0x5d6   :  { %v726_v32 = vmul.f32 1.442695, %v723_v30  ;;  %v2744_v30 = vld [vmem:[%s3779_s9] ss:$0 sm:$0xff] }
 0x5d7   :  { %v815_v35 = vpop.permute.xlu1 %814 }
 0x5d8   :  { %3137 = vpow2.f32 %v726_v32  ;;  %2961 = vmatpush3.msra.mxu1 %v815_v35 }
 0x5d9   :  { %2972 = vmatprep.subr.mxu1 %v207_v37 }
 0x5e1   :  { %v3136_v36 = vpop.eup %3135 }
 0x5e2   :  { %v728_v38 = vsel %vm381_vm3, %v3136_v36, 0.0 }
 0x5e3   :  { %729 = vadd.xlane.f32.xlu0 %v728_v38  ;;  %v1224_v38 = vld [vmem:[%s3782_s12 + $0x38] sm:$0xff] }
 0x5e5   :  { %v3138_v40 = vpop.eup %3137 }
 0x5e6   :  { %v731_v41 = vsel %vm381_vm3, %v3138_v40, 0.0 }
 0x5e7   :  { %732 = vadd.xlane.f32.xlu0 %v731_v41  ;;  %v1222_v41 = vld [vmem:[%s3782_s12 + $0x28] sm:$0xff] }
 0x5fd   :  { %738 = vrot.lane.b32.xlu0 %v3372_v39, %s3213_s1  ;;  %v206_v39 = vld [vmem:[%s3776_s6] sm:$0xff] }
 0x66c   :  { %v730_v42 = vpop.xlane.xlu0 %729 }
 0x66d   :  { %3139 = vrcp.f32 %v730_v42  ;;  %v1220_v42 = vld [vmem:[%s3782_s12 + $0x18] sm:$0xff] }
 0x670   :  { %v733_v44 = vpop.xlane.xlu0 %732 }
 0x671   :  { %3141 = vrcp.f32 %v733_v44  ;;  %v1219_v44 = vld [vmem:[%s3782_s12 + $0x10] sm:$0xff] }
 0x674   :  { %v739_v45 = vpop.permute.xlu0 %738 }
 0x675   :  { %2956 = vmatpush3.msra.mxu0 %v739_v45  ;;  %v1218_v45 = vld [vmem:[%s3782_s12 + $0x8] sm:$0xff] }
 0x676   :  { %2965 = vmatprep.subr.mxu0 %v209_v51 }
 0x67a   :  { %v3140_v46 = vpop.eup %3139 }
 0x67b   :  { %v736_v47 = vmul.f32 %v3140_v46, %v3136_v36  ;;  %v1217_v46 = vld [vmem:[%s3782_s12] sm:$0xff] }
 0x67d   :  { %2958 = vmatmul.mubr.msk.f32.vlgmr.msra.gmra.mxu0 %vm381_vm3, %v736_v47  ;;  %v2745_v47 = vld [vmem:[%s3781_s11] ss:$0 sm:$0xff] }
 0x67e   :  { %v3142_v49 = vpop.eup %3141  ;;  %2966 = vmatpush3.msra.mxu0 %v209_v51 }
 0x67f   :  { %v737_v50 = vmul.f32 %v3142_v49, %v3138_v40  ;;  %2967 = vmatprep.subr.mxu0 %v208_v52  ;;  %v1223_v40 = vld [vmem:[%s3782_s12 + $0x30] sm:$0xff] }
 0x680   :  { %2968 = vmatpush3.msra.mxu0 %v208_v52 }
 0x681   :  { %2963 = vmatmul.mubr.msk.f32.vlgmr.msra.gmra.mxu1 %vm381_vm3, %v737_v50 }
 0x682   :  { %2973 = vmatpush3.msra.mxu1 %v207_v37  ;;  %2976 = vmatprep.mubr.msk.f32.mxu1 %vm213_vm2, %v476_v12  ;;  %v1221_v37 = vld [vmem:[%s3782_s12 + $0x20] sm:$0xff] }
 0x683   :  { %2974 = vmatprep.subr.mxu1 %v206_v39 }
 0x684   :  { %2975 = vmatpush3.msra.mxu1 %v206_v39 }
 0x685   :  { %2977 = vmatmul.mubr.msk.f32.vlgmr.msra.gmra.mxu1 %vm213_vm2, %v552_v14  ;;  %2990 = vmatprep.subr.mxu1 %v1224_v38 }
 0x686   :  { %2991 = vmatpush3.msra.mxu1 %v1224_v38  ;;  %v2751_v38 = vld [vmem:[%s3784_s14] ss:$0 sm:$0xff] }
 0x687   :  { %2992 = vmatprep.subr.mxu1 %v1223_v40 }
 0x688   :  { %2993 = vmatpush3.msra.mxu1 %v1223_v40 }
 0x689   :  { %2994 = vmatprep.subr.mxu1 %v1222_v41 }
 0x68a   :  { %2995 = vmatpush3.msra.mxu1 %v1222_v41 }
 0x68b   :  { %2996 = vmatprep.subr.mxu1 %v1221_v37 }
 0x68c   :  { %2997 = vmatpush3.msra.mxu1 %v1221_v37  ;;  %v2752_v37 = vld [vmem:[%s3785_s15] ss:$0 sm:$0xff] }
 0x68d   :  { %2998 = vmatprep.subr.mxu1 %v1220_v42 }
 0x68e   :  { %2999 = vmatpush3.msra.mxu1 %v1220_v42 }
 0x68f   :  { %3000 = vmatprep.subr.mxu1 %v1219_v44 }
 0x690   :  { %3001 = vmatpush3.msra.mxu1 %v1219_v44 }
 0x691   :  { %3002 = vmatprep.subr.mxu1 %v1218_v45 }
 0x692   :  { %3003 = vmatpush3.msra.mxu1 %v1218_v45 }
 0x693   :  { %3004 = vmatprep.subr.mxu1 %v1217_v46 }
 0x694   :  { %3005 = vmatpush3.msra.mxu1 %v1217_v46 }
 0x695   :  { %3025 = vmatprep.subr.mxu1 %v3207_v34 }
 0x73d   :  { %v810_v53 = vpop.f32.mrf.mxu0 }
 0x73e   :  { %2969 = vmatprep.mubr.msk.f32.mxu0 %vm213_vm2, %v810_v53 }
 0x73f   :  { %v2959_v54 = vpop.f32.mrf.mxu0 }
 0x741   :  { %v886_v55 = vpop.f32.mrf.mxu1 }
 0x742   :  { %2970 = vmatmul.mubr.msk.f32.vlgmr.msra.gmra.mxu0 %vm213_vm2, %v886_v55 }
 0x743   :  { %v2964_v56 = vpop.f32.mrf.mxu1 }
 0x745   :  { %v2978_v57 = vpop.f32.mrf.mxu1 }
 0x747   :  { %v1043_v61 = vpop.f32.mrf.mxu1 }
 0x802   :  { %v2971_v58 = vpop.f32.mrf.mxu0 }
 0x803   :  { %v1049_v60 = vadd.f32 %v2978_v57, %v2971_v58 }
 0x804   :  { %v962_v62 = vpop.f32.mrf.mxu0 }
 0x805   :  { %v1060_v63 = vadd.f32 %v2742_v59, %v1049_v60  ;;  %v1044_v0 = vadd.f32 %v1043_v61, %v962_v62 }
 0x807   :  { %v1059_v1 = vadd.f32 %v2742_v59, %v1044_v0  ;;  %v1062_v2 = vadd.f32 %v1060_v63, %v3352_v33 }
 0x809   :  { %v1068_v3 = vsel %vm68_vm0, %v1062_v2, 0.0  ;;  %v1061_v4 = vadd.f32 %v1059_v1, %v3343_v31  ;;  %v1110_v31 = vld [vmem:[%s3780_s10 + $0x18] sm:$0xff] }
 0x80a   :  { %1069 = vadd.xlane.f32.xlu0 %v1068_v3  ;;  %2979 = vmatprep.subr.mxu0 %v1110_v31 }
 0x80b   :  { %v1065_v5 = vsel %vm68_vm0, %v1061_v4, 0.0  ;;  %2980 = vmatpush3.msra.mxu0 %v1110_v31 }
 0x80c   :  { %1066 = vadd.xlane.f32.xlu1 %v1065_v5  ;;  %2981 = vmatprep.subr.mxu0 %v1109_v15 }
 0x80d   :  { %2982 = vmatpush3.msra.mxu0 %v1109_v15 }
 0x80e   :  { %2983 = vmatprep.subr.mxu0 %v1108_v16 }
 0x80f   :  { %2984 = vmatpush3.msra.mxu0 %v1108_v16 }
 0x810   :  { %2985 = vmatprep.subr.mxu0 %v1107_v17 }
 0x811   :  { %2986 = vmatpush3.msra.mxu0 %v1107_v17 }
 0x893   :  { %v1070_v6 = vpop.xlane.xlu0 %1069 }
 0x894   :  { %v1072_v7 = vmul.f32 0.03125, %v1070_v6  ;;  %v2748_v6 = vld [vmem:[%s3783_s13] ss:$0 sm:$0xff] }
 0x895   :  { %v1067_v8 = vpop.xlane.xlu1 %1066 }
 0x896   :  { %v1074_v9 = vsub.f32 %v1062_v2, %v1072_v7  ;;  %v1071_v10 = vmul.f32 0.03125, %v1067_v8 }
 0x898   :  { %v1073_v11 = vsub.f32 %v1061_v4, %v1071_v10  ;;  %v1076_v12 = vmul.f32 %v1074_v9, %v1074_v9 }
 0x89a   :  { %v1080_v13 = vsel %vm68_vm0, %v1076_v12, 0.0  ;;  %v1075_v14 = vmul.f32 %v1073_v11, %v1073_v11 }
 0x89b   :  { %1081 = vadd.xlane.f32.xlu1 %v1080_v13 }
 0x89c   :  { %v1077_v33 = vsel %vm68_vm0, %v1075_v14, 0.0 }
 0x89d   :  { %1078 = vadd.xlane.f32.xlu0 %v1077_v33 }
 0x924   :  { %v1082_v18 = vpop.xlane.xlu1 %1081 }
 0x925   :  { %v1084_v19 = vmul.f32 0.03125, %v1082_v18 }
 0x926   :  { %v1079_v20 = vpop.xlane.xlu0 %1078 }
 0x927   :  { %v1086_v21 = vadd.f32 1e-12, %v1084_v19  ;;  %v1083_v22 = vmul.f32 0.03125, %v1079_v20 }
 0x929   :  { %3143 = vrsqrt.f32 %v1086_v21  ;;  %v1085_v23 = vadd.f32 1e-12, %v1083_v22 }
 0x92b   :  { %3145 = vrsqrt.f32 %v1085_v23  ;;  %v2758_v23 = vld [vmem:[%s3774_s4 + $0x38] sm:$0xff] }
 0x92c   :  { %3009 = vmatprep.subr.mxu0 %v2758_v23 }
 0x936   :  { %v3144_v24 = vpop.eup %3143 }
 0x937   :  { %v1090_v26 = vmul.f32 %v3144_v24, %v1074_v9  ;;  %v2757_v24 = vld [vmem:[%s3774_s4 + $0x30] sm:$0xff] }
 0x938   :  { %v3146_v27 = vpop.eup %3145 }
 0x939   :  { %v1089_v28 = vmul.f32 %v3146_v27, %v1073_v11  ;;  %v1098_v29 = vmul.f32 %v2743_v25, %v1090_v26  ;;  %v2755_v26 = vld [vmem:[%s3774_s4 + $0x20] sm:$0xff] }
 0x93b   :  { %v1097_v32 = vmul.f32 %v2743_v25, %v1089_v28  ;;  %v1106_v36 = vadd.f32 %v2744_v30, %v1098_v29  ;;  %v2756_v25 = vld [vmem:[%s3774_s4 + $0x28] sm:$0xff] }
 0x93d   :  { %v3491_v35 = vadd.f32 %v2744_v30, %v1097_v32 }
 0x93f   :  { %2987 = vmatprep.mubr.msk.f32.mxu0 %vm68_vm0, %v3491_v35 }
 0x940   :  { %2988 = vmatmul.mubr.msk.f32.vlgmr.msra.gmra.mxu0 %vm68_vm0, %v1106_v36 }
 0x941   :  { %3010 = vmatpush3.msra.mxu0 %v2758_v23 }
 0x942   :  { %3011 = vmatprep.subr.mxu0 %v2757_v24 }
 0x943   :  { %3012 = vmatpush3.msra.mxu0 %v2757_v24 }
 0x944   :  { %3013 = vmatprep.subr.mxu0 %v2756_v25 }
 0x945   :  { %3014 = vmatpush3.msra.mxu0 %v2756_v25 }
 0x946   :  { %3015 = vmatprep.subr.mxu0 %v2755_v26 }
 0x947   :  { %3016 = vmatpush3.msra.mxu0 %v2755_v26 }
 0x948   :  { %3020 = vmatprep.subr.mxu0 %v3207_v34 }
 0xa00   :  { %v2989_v49 = vpop.f32.mrf.mxu0 }
 0xa01   :  { %v1196_v50 = vadd.f32 %v2989_v49, %v2745_v47  ;;  %v2760_v49 = vld [vmem:[%s3775_s5 + $0x1] ss:$0 sm:$0xff] }
 0xa02   :  { %v1190_v39 = vpop.f32.mrf.mxu0 }
 0xa03   :  { %v1202_v51 = vmul.f32 0.044715, %v1196_v50  ;;  %v1191_v52 = vadd.f32 %v2745_v47, %v1190_v39  ;;  %v1200_v3 = vmul.f32 0.5, %v1196_v50 }
 0xa05   :  { %v1204_v53 = vmul.f32 %v1202_v51, %v1196_v50  ;;  %v1201_v54 = vmul.f32 0.044715, %v1191_v52  ;;  %v1199_v1 = vmul.f32 0.5, %v1191_v52 }
 0xa07   :  { %v1206_v55 = vmul.f32 %v1204_v53, %v1196_v50  ;;  %v1203_v56 = vmul.f32 %v1201_v54, %v1191_v52 }
 0xa09   :  { %v1208_v57 = vadd.f32 %v1206_v55, %v1196_v50  ;;  %v1205_v58 = vmul.f32 %v1203_v56, %v1191_v52 }
 0xa0b   :  { %v1210_v59 = vmul.f32 0.7978846, %v1208_v57  ;;  %v1207_v60 = vadd.f32 %v1205_v58, %v1191_v52 }
 0xa0d   :  { %3147 = vtanh.f32 %v1210_v59  ;;  %v1209_v61 = vmul.f32 0.7978846, %v1207_v60 }
 0xa0f   :  { %3149 = vtanh.f32 %v1209_v61 }
 0xa1a   :  { %v3148_v62 = vpop.eup %3147 }
 0xa1b   :  { %v1214_v0 = vadd.f32 1.0, %v3148_v62 }
 0xa1c   :  { %v3150_v63 = vpop.eup %3149 }
 0xa1d   :  { %v1213_v2 = vadd.f32 1.0, %v3150_v63  ;;  %v1216_v5 = vmul.f32 %v1214_v0, %v1200_v3 }
 0xa1f   :  { %v1215_v4 = vmul.f32 %v1213_v2, %v1199_v1 }
 0xa21   :  { %3006 = vmatprep.mubr.msk.f32.mxu1 %vm1232_vm4, %v1215_v4 }
 0xa22   :  { %3007 = vmatmul.mubr.msk.f32.vlgmr.msra.gmra.mxu1 %vm1232_vm4, %v1216_v5 }
 0xa23   :  { %3027 = vmatprep.mubr.msk.f32.mxu1 %vm3208_vm1, %v3207_v34 }
 0xae2   :  { %v3008_v7 = vpop.f32.mrf.mxu1 }
 0xae3   :  { %v1311_v8 = vadd.f32 %v3008_v7, %v2748_v6 }
 0xae4   :  { %v1305_v9 = vpop.f32.mrf.mxu1 }
 0xae5   :  { %v1306_v10 = vadd.f32 %v2748_v6, %v1305_v9  ;;  %v1315_v11 = vadd.f32 %v1311_v8, %v1106_v36 }
 0xae7   :  { %v1321_v12 = vsel %vm68_vm0, %v1315_v11, 0.0  ;;  %v1314_v13 = vadd.f32 %v1306_v10, %v3491_v35 }
 0xae8   :  { %1322 = vadd.xlane.f32.xlu1 %v1321_v12 }
 0xae9   :  { %v1318_v14 = vsel %vm68_vm0, %v1314_v13, 0.0 }
 0xaea   :  { %1319 = vadd.xlane.f32.xlu0 %v1318_v14 }
 0xb71   :  { %v1323_v33 = vpop.xlane.xlu1 %1322 }
 0xb72   :  { %v1325_v31 = vmul.f32 0.03125, %v1323_v33 }
 0xb73   :  { %v1320_v15 = vpop.xlane.xlu0 %1319 }
 0xb74   :  { %v1327_v16 = vsub.f32 %v1315_v11, %v1325_v31  ;;  %v1324_v17 = vmul.f32 0.03125, %v1320_v15 }
 0xb76   :  { %v1326_v18 = vsub.f32 %v1314_v13, %v1324_v17  ;;  %v1329_v19 = vmul.f32 %v1327_v16, %v1327_v16 }
 0xb78   :  { %v1333_v20 = vsel %vm68_vm0, %v1329_v19, 0.0  ;;  %v1328_v21 = vmul.f32 %v1326_v18, %v1326_v18 }
 0xb79   :  { %1334 = vadd.xlane.f32.xlu1 %v1333_v20 }
 0xb7a   :  { %v1330_v22 = vsel %vm68_vm0, %v1328_v21, 0.0 }
 0xb7b   :  { %1331 = vadd.xlane.f32.xlu0 %v1330_v22 }
 0xc02   :  { %v1335_v27 = vpop.xlane.xlu1 %1334 }
 0xc03   :  { %v1337_v28 = vmul.f32 0.03125, %v1335_v27 }
 0xc04   :  { %v1332_v29 = vpop.xlane.xlu0 %1331 }
 0xc05   :  { %v1339_v30 = vadd.f32 1e-12, %v1337_v28  ;;  %v1336_v32 = vmul.f32 0.03125, %v1332_v29 }
 0xc07   :  { %3151 = vrsqrt.f32 %v1339_v30  ;;  %v1338_v35 = vadd.f32 1e-12, %v1336_v32 }
 0xc09   :  { %3153 = vrsqrt.f32 %v1338_v35 }
 0xc14   :  { %v3152_v36 = vpop.eup %3151 }
 0xc15   :  { %v1343_v40 = vmul.f32 %v3152_v36, %v1327_v16 }
 0xc16   :  { %v3154_v41 = vpop.eup %3153 }
 0xc17   :  { %v1342_v42 = vmul.f32 %v3154_v41, %v1326_v18  ;;  %v1351_v44 = vmul.f32 %v2751_v38, %v1343_v40 }
 0xc19   :  { %v1350_v45 = vmul.f32 %v2751_v38, %v1342_v42  ;;  %v3555_v46 = vadd.f32 %v2752_v37, %v1351_v44 }
 0xc1b   :  { %v3557_v47 = vadd.f32 %v2752_v37, %v1350_v45  ;;  %2754 = vst.msk [vmem:[%s3788_s18 + $0x18] sm:$0xff] %vm68_vm0, %v3555_v46 }
 0xc1d   :  { %2753 = vst.msk [vmem:[%s3788_s18 + $0x10] sm:$0xff] %vm68_vm0, %v3557_v47  ;;  %3017 = vmatprep.mubr.msk.f32.mxu0 %vm68_vm0, %v3557_v47 }
 0xc1e   :  { %3018 = vmatmul.mubr.msk.f32.vlgmr.msra.gmra.mxu0 %vm68_vm0, %v3555_v46 }
 0xc1f   :  { %3022 = vmatprep.mubr.msk.f32.mxu0 %vm3208_vm1, %v3207_v34 }
 0xcde   :  { %v3019_v50 = vpop.f32.mrf.mxu0 }
 0xcdf   :  { %v3578_v39 = vadd.f32 %v3019_v50, %v2760_v49 }
 0xce0   :  { %v1448_v51 = vpop.f32.mrf.mxu0 }
 0xce1   :  { %v3580_v52 = vadd.f32 %v2760_v49, %v1448_v51  ;;  %1540 = vrot.lane.b32.xlu1 %v3578_v39, %s3209_s3 }
 0xce3   :  { %1463 = vrot.lane.b32.xlu0 %v3580_v52, %s3209_s3 }
 0xd53   :  { %v1541_v53 = vpop.permute.xlu1 %1540 }
 0xd54   :  { %3026 = vmatpush3.xpose.msk.msra.mxu1 %vm213_vm2, %v1541_v53 }
 0xd55   :  { %v1464_v54 = vpop.permute.xlu0 %1463  ;;  %3035 = vmatprep.subr.mxu1 %v3207_v34 }
 0xd56   :  { %3021 = vmatpush3.xpose.msk.msra.mxu0 %vm213_vm2, %v1464_v54 }
 0xd57   :  { %3028 = vmatmul.mubr.msk.f32.vlgmr.msra.gmra.mxu1 %vm213_vm2, %v3578_v39  ;;  %3030 = vmatprep.subr.mxu0 %v3207_v34 }
 0xd58   :  { %3037 = vmatprep.mubr.msk.f32.mxu1 %vm3208_vm1, %v3207_v34 }
 0xd59   :  { %3023 = vmatmul.mubr.msk.f32.vlgmr.msra.gmra.mxu0 %vm213_vm2, %v3580_v52 }
 0xd5a   :  { %3032 = vmatprep.mubr.msk.f32.mxu0 %vm3208_vm1, %v3207_v34 }
 0xe17   :  { %v1612_v55 = vpop.f32.mrf.mxu1 }
 0xe18   :  { %v1617_v56 = vmul.f32 0.25, %v1612_v55 }
 0xe19   :  { %v1535_v57 = vpop.f32.mrf.mxu0  ;;  %v3029_v58 = vpop.f32.mrf.mxu1 }
 0xe1a   :  { %v1616_v59 = vmul.f32 0.25, %v1535_v57  ;;  %v1619_v60 = vadd.f32 %v3399_v48, %v1617_v56  ;;  %v2763_v58 = vld [vmem:[%s3776_s6 + $0x20] sm:$0xff] }
 0xe1b   :  { %v3024_v61 = vpop.f32.mrf.mxu0 }
 0xe1c   :  { %v1623_v62 = vsel %vm381_vm3, %v1619_v60, -inf  ;;  %v1618_v63 = vadd.f32 %v3393_v43, %v1616_v59  ;;  %v2765_v61 = vld [vmem:[%s3776_s6 + $0x30] sm:$0xff] }
 0xe1d   :  { %1624 = vmax.xlane.f32.xlu0 %v1623_v62 }
 0xe1e   :  { %v1620_v0 = vsel %vm381_vm3, %v1618_v63, -inf }
 0xe1f   :  { %1621 = vmax.xlane.f32.xlu1 %v1620_v0 }
 0xea6   :  { %v1625_v1 = vpop.xlane.xlu0 %1624 }
 0xea7   :  { %v1627_v2 = vsub.f32 %v1619_v60, %v1625_v1  ;;  %v2766_v60 = vld [vmem:[%s3776_s6 + $0x38] sm:$0xff] }
 0xea8   :  { %v1622_v3 = vpop.xlane.xlu1 %1621 }
 0xea9   :  { %v1630_v4 = vmul.f32 1.442695, %v1627_v2  ;;  %v1626_v5 = vsub.f32 %v1618_v63, %v1622_v3 }
 0xeab   :  { %3155 = vpow2.f32 %v1630_v4  ;;  %v1628_v6 = vmul.f32 1.442695, %v1626_v5  ;;  %v2784_v4 = vld [vmem:[%s3777_s7 + $0x1] ss:$0 sm:$0xff] }
 0xead   :  { %3157 = vpow2.f32 %v1628_v6 }
 0xeb8   :  { %v3156_v7 = vpop.eup %3155 }
 0xeb9   :  { %v1635_v8 = vsel %vm381_vm3, %v3156_v7, 0.0 }
 0xeba   :  { %v3158_v9 = vpop.eup %3157  ;;  %1636 = vadd.xlane.f32.xlu1 %v1635_v8 }
 0xebb   :  { %v1632_v10 = vsel %vm381_vm3, %v3158_v9, 0.0 }
 0xebc   :  { %1633 = vadd.xlane.f32.xlu0 %v1632_v10 }
 0xecb   :  { %1718 = vrot.lane.b32.xlu1 %v3578_v39, %s3210_s30 }
 0xecf   :  { %1796 = vrot.lane.b32.xlu1 %v3580_v52, %s3211_s20 }
 0xed2   :  { %1642 = vrot.lane.b32.xlu0 %v3580_v52, %s3210_s30 }
 0xed3   :  { %1874 = vrot.lane.b32.xlu1 %v3578_v39, %s3211_s20 }
 0xed6   :  { %1794 = vrot.lane.b32.xlu0 %v3580_v52, %s3212_s21 }
 0xed7   :  { %1872 = vrot.lane.b32.xlu1 %v3578_v39, %s3212_s21 }
 0xf43   :  { %v1637_v11 = vpop.xlane.xlu1 %1636 }
 0xf44   :  { %3159 = vrcp.f32 %v1637_v11 }
 0xf45   :  { %v1634_v12 = vpop.xlane.xlu0 %1633 }
 0xf46   :  { %3161 = vrcp.f32 %v1634_v12 }
 0xf47   :  { %v1719_v13 = vpop.permute.xlu1 %1718 }
 0xf48   :  { %3036 = vmatpush3.msra.mxu1 %v1719_v13 }
 0xf49   :  { %v1643_v14 = vpop.permute.xlu0 %1642  ;;  %3045 = vmatprep.subr.mxu1 %v3207_v34 }
 0xf4a   :  { %3031 = vmatpush3.msra.mxu0 %v1643_v14 }
 0xf4b   :  { %v1797_v33 = vpop.permute.xlu1 %1796  ;;  %3040 = vmatprep.subr.mxu0 %v3207_v34 }
 0xf4d   :  { %v1795_v20 = vpop.permute.xlu0 %1794 }
 0xf4f   :  { %v1875_v15 = vpop.permute.xlu1 %1874 }
 0xf51   :  { %v3160_v31 = vpop.eup %3159 }
 0xf52   :  { %v1641_v16 = vmul.f32 %v3160_v31, %v3156_v7 }
 0xf53   :  { %v3162_v17 = vpop.eup %3161  ;;  %v1873_v19 = vpop.permute.xlu1 %1872 }
 0xf54   :  { %3038 = vmatmul.mubr.msk.f32.vlgmr.msra.gmra.mxu1 %vm381_vm3, %v1641_v16  ;;  %v1640_v18 = vmul.f32 %v3162_v17, %v3158_v9 }
 0xf55   :  { %3046 = vmatpush3.xpose.msk.msra.mxu1 %vm213_vm2, %v1875_v15  ;;  %3047 = vmatprep.mubr.msk.f32.mxu1 %vm3208_vm1, %v3207_v34 }
 0xf56   :  { %3033 = vmatmul.mubr.msk.f32.vlgmr.msra.gmra.mxu0 %vm381_vm3, %v1640_v18  ;;  %3055 = vmatprep.subr.mxu1 %v3207_v34 }
 0xf57   :  { %3041 = vmatpush3.xpose.msk.msra.mxu0 %vm213_vm2, %v1797_v33  ;;  %3042 = vmatprep.mubr.msk.f32.mxu0 %vm3208_vm1, %v3207_v34 }
 0xf58   :  { %3048 = vmatmul.mubr.msk.f32.vlgmr.msra.gmra.mxu1 %vm213_vm2, %v1873_v19  ;;  %3050 = vmatprep.subr.mxu0 %v3207_v34 }
 0xf59   :  { %3057 = vmatprep.mubr.msk.f32.mxu1 %vm3208_vm1, %v3207_v34 }
 0xf5a   :  { %3043 = vmatmul.mubr.msk.f32.vlgmr.msra.gmra.mxu0 %vm213_vm2, %v1795_v20 }
 0xf5b   :  { %3052 = vmatprep.mubr.msk.f32.mxu0 %vm3208_vm1, %v3207_v34 }
0x1014   :  { %v1790_v21 = vpop.f32.mrf.mxu1 }
0x1016   :  { %v1714_v22 = vpop.f32.mrf.mxu0  ;;  %v3039_v23 = vpop.f32.mrf.mxu1 }
0x1017   :  { %v2790_v23 = vld [vmem:[%s3780_s10 + $0x28] sm:$0xff] }
0x1018   :  { %v3034_v24 = vpop.f32.mrf.mxu0  ;;  %v1946_v25 = vpop.f32.mrf.mxu1 }
0x1019   :  { %v1951_v26 = vmul.f32 0.25, %v1946_v25  ;;  %v2789_v24 = vld [vmem:[%s3780_s10 + $0x20] sm:$0xff] }
0x101a   :  { %v1868_v27 = vpop.f32.mrf.mxu0  ;;  %v3049_v28 = vpop.f32.mrf.mxu1 }
0x101b   :  { %v1950_v29 = vmul.f32 0.25, %v1868_v27  ;;  %v1953_v30 = vadd.f32 %v3399_v48, %v1951_v26 }
0x101c   :  { %v3044_v32 = vpop.f32.mrf.mxu0 }
0x101d   :  { %v1957_v35 = vsel %vm381_vm3, %v1953_v30, -inf  ;;  %v1952_v36 = vadd.f32 %v3393_v43, %v1950_v29 }
0x101e   :  { %1958 = vmax.xlane.f32.xlu1 %v1957_v35  ;;  %v2787_v35 = vld [vmem:[%s3778_s8 + $0x1] ss:$0 sm:$0xff] }
0x101f   :  { %v1954_v38 = vsel %vm381_vm3, %v1952_v36, -inf }
0x1020   :  { %1955 = vmax.xlane.f32.xlu0 %v1954_v38 }
0x102f   :  { %2052 = vrot.lane.b32.xlu1 %v3578_v39, %s3213_s1  ;;  %v2764_v39 = vld [vmem:[%s3776_s6 + $0x28] sm:$0xff]  ;;  %s3214_s6 = smov [#allocation2]  }
0x1030   :  { %s2709_s7 = sshll.u32 %s3214_s6, 4  ;;  %s2710_s7 = int_to_ptr.vmem [resolvable:$true] %s2709_s7 }
0x1031   :  { %s3185_s23 = scalar_lea.vmem %s2710_s7, 32  ;;  %p3190_p1 = scmp.lt.s32.totalorder %s2710_s7, %s2710_s7 }
0x1032   :  { %p3186_p0 = scmp.ne.s32.totalorder %s2710_s7, %s3185_s23  ;;  %p3191_p2 = scmp.lt.s32.totalorder %s3185_s23, %s3185_s23 }
0x1034   :  { %p3192_p3 = por %p3191_p2, %p3190_p1 }
0x1036   :  { %p3193_p4 = pnand %p3192_p3, %p3186_p0 }
0x10a7   :  { %v1959_v40 = vpop.xlane.xlu1 %1958 }
0x10a8   :  { %v1961_v41 = vsub.f32 %v1953_v30, %v1959_v40 }
0x10a9   :  { %v1956_v37 = vpop.xlane.xlu0 %1955 }
0x10aa   :  { %v1964_v42 = vmul.f32 1.442695, %v1961_v41  ;;  %v1960_v44 = vsub.f32 %v1952_v36, %v1956_v37  ;;  %v2788_v37 = vld [vmem:[%s3779_s9 + $0x1] ss:$0 sm:$0xff] }
0x10ab   :  { %v2053_v45 = vpop.permute.xlu1 %2052 }
0x10ac   :  { %3163 = vpow2.f32 %v1964_v42  ;;  %v1962_v48 = vmul.f32 1.442695, %v1960_v44  ;;  %3056 = vmatpush3.msra.mxu1 %v2053_v45 }
0x10ad   :  { %3067 = vmatprep.subr.mxu1 %v2764_v39 }
0x10ae   :  { %3165 = vpow2.f32 %v1962_v48  ;;  %v2804_v48 = vld [vmem:[%s3782_s12 + $0x78] sm:$0xff] }
0x10b9   :  { %v3164_v49 = vpop.eup %3163 }
0x10ba   :  { %v1969_v43 = vsel %vm381_vm3, %v3164_v49, 0.0 }
0x10bb   :  { %v3166_v50 = vpop.eup %3165  ;;  %1970 = vadd.xlane.f32.xlu0 %v1969_v43  ;;  %v2802_v43 = vld [vmem:[%s3782_s12 + $0x68] sm:$0xff] }
0x10bc   :  { %v1966_v51 = vsel %vm381_vm3, %v3166_v50, 0.0 }
0x10bf   :  { %1967 = vadd.xlane.f32.xlu0 %v1966_v51  ;;  %v2800_v51 = vld [vmem:[%s3782_s12 + $0x58] sm:$0xff] }
0x10d5   :  { %1976 = vrot.lane.b32.xlu0 %v3580_v52, %s3213_s1 }
0x1144   :  { %v1971_v53 = vpop.xlane.xlu0 %1970 }
0x1145   :  { %3167 = vrcp.f32 %v1971_v53  ;;  %v2798_v53 = vld [vmem:[%s3782_s12 + $0x48] sm:$0xff] }
0x1148   :  { %v1968_v54 = vpop.xlane.xlu0 %1967 }
0x1149   :  { %3169 = vrcp.f32 %v1968_v54  ;;  %v2797_v54 = vld [vmem:[%s3782_s12 + $0x40] sm:$0xff] }
0x114c   :  { %v1977_v55 = vpop.permute.xlu0 %1976 }
0x114d   :  { %3051 = vmatpush3.msra.mxu0 %v1977_v55  ;;  %v2794_v55 = vld [vmem:[%s3781_s11 + $0x1] ss:$0 sm:$0xff] }
0x114e   :  { %3060 = vmatprep.subr.mxu0 %v2766_v60 }
0x1152   :  { %v3168_v56 = vpop.eup %3167 }
0x1153   :  { %v1975_v57 = vmul.f32 %v3168_v56, %v3164_v49  ;;  %v2803_v49 = vld [vmem:[%s3782_s12 + $0x70] sm:$0xff] }
0x1155   :  { %3058 = vmatmul.mubr.msk.f32.vlgmr.msra.gmra.mxu1 %vm381_vm3, %v1975_v57 }
0x1156   :  { %v3170_v52 = vpop.eup %3169  ;;  %3068 = vmatpush3.msra.mxu1 %v2764_v39  ;;  %3071 = vmatprep.mubr.msk.f32.mxu1 %vm213_vm2, %v1714_v22  ;;  %v2791_v22 = vld [vmem:[%s3780_s10 + $0x30] sm:$0xff] }
0x1157   :  { %3069 = vmatprep.subr.mxu1 %v2763_v58  ;;  %v1974_v59 = vmul.f32 %v3170_v52, %v3166_v50  ;;  %v2801_v50 = vld [vmem:[%s3782_s12 + $0x60] sm:$0xff]  ;;  %v2799_v39 = vld [vmem:[%s3782_s12 + $0x50] sm:$0xff] }
0x1158   :  { %3070 = vmatpush3.msra.mxu1 %v2763_v58 }
0x1159   :  { %3053 = vmatmul.mubr.msk.f32.vlgmr.msra.gmra.mxu0 %vm381_vm3, %v1974_v59  ;;  %3072 = vmatmul.mubr.msk.f32.vlgmr.msra.gmra.mxu1 %vm213_vm2, %v1790_v21 }
0x115a   :  { %3061 = vmatpush3.msra.mxu0 %v2766_v60  ;;  %3085 = vmatprep.subr.mxu1 %v2804_v48 }
0x115b   :  { %3062 = vmatprep.subr.mxu0 %v2765_v61  ;;  %3086 = vmatpush3.msra.mxu1 %v2804_v48 }
0x115c   :  { %3063 = vmatpush3.msra.mxu0 %v2765_v61  ;;  %3087 = vmatprep.subr.mxu1 %v2803_v49 }
0x115d   :  { %3088 = vmatpush3.msra.mxu1 %v2803_v49 }
0x115e   :  { %3089 = vmatprep.subr.mxu1 %v2802_v43 }
0x115f   :  { %3090 = vmatpush3.msra.mxu1 %v2802_v43 }
0x1160   :  { %3091 = vmatprep.subr.mxu1 %v2801_v50 }
0x1161   :  { %3092 = vmatpush3.msra.mxu1 %v2801_v50 }
0x1162   :  { %3093 = vmatprep.subr.mxu1 %v2800_v51 }
0x1163   :  { %3094 = vmatpush3.msra.mxu1 %v2800_v51 }
0x1164   :  { %3095 = vmatprep.subr.mxu1 %v2799_v39 }
0x1165   :  { %3096 = vmatpush3.msra.mxu1 %v2799_v39 }
0x1166   :  { %3097 = vmatprep.subr.mxu1 %v2798_v53 }
0x1167   :  { %3098 = vmatpush3.msra.mxu1 %v2798_v53 }
0x1168   :  { %3099 = vmatprep.subr.mxu1 %v2797_v54 }
0x1169   :  { %3100 = vmatpush3.msra.mxu1 %v2797_v54 }
0x1215   :  { %v2124_v62 = vpop.f32.mrf.mxu1 }
0x1217   :  { %v3059_v63 = vpop.f32.mrf.mxu1 }
0x1219   :  { %v2048_v0 = vpop.f32.mrf.mxu0  ;;  %v3073_v2 = vpop.f32.mrf.mxu1 }
0x121a   :  { %3064 = vmatprep.mubr.msk.f32.mxu0 %vm213_vm2, %v2048_v0 }
0x121b   :  { %v3054_v1 = vpop.f32.mrf.mxu0  ;;  %3065 = vmatmul.mubr.msk.f32.vlgmr.msra.gmra.mxu0 %vm213_vm2, %v2124_v62  ;;  %v2281_v6 = vpop.f32.mrf.mxu1 }
0x12db   :  { %v3066_v3 = vpop.f32.mrf.mxu0 }
0x12dc   :  { %v2287_v5 = vadd.f32 %v3073_v2, %v3066_v3 }
0x12dd   :  { %v2200_v7 = vpop.f32.mrf.mxu0 }
0x12de   :  { %v2299_v8 = vadd.f32 %v2784_v4, %v2287_v5  ;;  %v2282_v9 = vadd.f32 %v2281_v6, %v2200_v7 }
0x12e0   :  { %v2298_v10 = vadd.f32 %v2784_v4, %v2282_v9  ;;  %v2301_v11 = vadd.f32 %v2299_v8, %v3555_v46 }
0x12e2   :  { %v2309_v12 = vsel %vm68_vm0, %v2301_v11, 0.0  ;;  %v2300_v13 = vadd.f32 %v2298_v10, %v3557_v47  ;;  %v2792_v47 = vld [vmem:[%s3780_s10 + $0x38] sm:$0xff] }
0x12e3   :  { %2310 = vadd.xlane.f32.xlu0 %v2309_v12  ;;  %3074 = vmatprep.subr.mxu0 %v2792_v47 }
0x12e4   :  { %v2306_v14 = vsel %vm68_vm0, %v2300_v13, 0.0  ;;  %3075 = vmatpush3.msra.mxu0 %v2792_v47 }
0x12e5   :  { %2307 = vadd.xlane.f32.xlu1 %v2306_v14  ;;  %3076 = vmatprep.subr.mxu0 %v2791_v22 }
0x12e6   :  { %3077 = vmatpush3.msra.mxu0 %v2791_v22 }
0x12e7   :  { %3078 = vmatprep.subr.mxu0 %v2790_v23 }
0x12e8   :  { %3079 = vmatpush3.msra.mxu0 %v2790_v23 }
0x12e9   :  { %3080 = vmatprep.subr.mxu0 %v2789_v24 }
0x12ea   :  { %3081 = vmatpush3.msra.mxu0 %v2789_v24 }
0x12eb   :  { %3104 = vmatprep.subr.mxu0 %v3207_v34 }
0x136c   :  { %v2311_v33 = vpop.xlane.xlu0 %2310 }
0x136d   :  { %v2313_v31 = vmul.f32 0.03125, %v2311_v33 }
0x136e   :  { %v2308_v15 = vpop.xlane.xlu1 %2307 }
0x136f   :  { %v2315_v16 = vsub.f32 %v2301_v11, %v2313_v31  ;;  %v2312_v17 = vmul.f32 0.03125, %v2308_v15 }
0x1371   :  { %v2314_v18 = vsub.f32 %v2300_v13, %v2312_v17  ;;  %v2317_v19 = vmul.f32 %v2315_v16, %v2315_v16  ;;  %v2806_v13 = vld [vmem:[%s3783_s13 + $0x1] ss:$0 sm:$0xff] }
0x1373   :  { %v2321_v20 = vsel %vm68_vm0, %v2317_v19, 0.0  ;;  %v2316_v21 = vmul.f32 %v2314_v18, %v2314_v18 }
0x1374   :  { %2322 = vadd.xlane.f32.xlu1 %v2321_v20 }
0x1375   :  { %v2318_v46 = vsel %vm68_vm0, %v2316_v21, 0.0 }
0x1376   :  { %2319 = vadd.xlane.f32.xlu0 %v2318_v46 }
0x13fd   :  { %v2323_v25 = vpop.xlane.xlu1 %2322 }
0x13fe   :  { %v2325_v26 = vmul.f32 0.03125, %v2323_v25 }
0x13ff   :  { %v2320_v27 = vpop.xlane.xlu0 %2319 }
0x1400   :  { %v2327_v28 = vadd.f32 1e-12, %v2325_v26  ;;  %v2324_v29 = vmul.f32 0.03125, %v2320_v27 }
0x1402   :  { %3171 = vrsqrt.f32 %v2327_v28  ;;  %v2326_v30 = vadd.f32 1e-12, %v2324_v29  ;;  %v2617_v28 = vld [vmem:[%s3786_s16 + $0x18] sm:$0xff]  ;;  %v2616_v29 = vld [vmem:[%s3786_s16 + $0x10] sm:$0xff] }
0x1404   :  { %3173 = vrsqrt.f32 %v2326_v30  ;;  %v2615_v30 = vld [vmem:[%s3786_s16 + $0x8] sm:$0xff] }
0x140f   :  { %v3172_v32 = vpop.eup %3171 }
0x1410   :  { %v2331_v36 = vmul.f32 %v3172_v32, %v2315_v16  ;;  %v2614_v32 = vld [vmem:[%s3786_s16] sm:$0xff] }
0x1411   :  { %v3174_v38 = vpop.eup %3173 }
0x1412   :  { %v2330_v40 = vmul.f32 %v3174_v38, %v2314_v18  ;;  %v2339_v41 = vmul.f32 %v2787_v35, %v2331_v36 }
0x1414   :  { %v2338_v42 = vmul.f32 %v2787_v35, %v2330_v40  ;;  %v2347_v45 = vadd.f32 %v2788_v37, %v2339_v41 }
0x1416   :  { %v3690_v44 = vadd.f32 %v2788_v37, %v2338_v42 }
0x1418   :  { %3082 = vmatprep.mubr.msk.f32.mxu0 %vm68_vm0, %v3690_v44 }
0x1419   :  { %3083 = vmatmul.mubr.msk.f32.vlgmr.msra.gmra.mxu0 %vm68_vm0, %v2347_v45 }
0x141a   :  { %3112 = vmatprep.mubr.msk.f32.mxu0 %vm3208_vm1, %v3207_v34  ;;  %3105 = vmatpush3.msra.mxu0 %v2617_v28 }
0x141b   :  { %3106 = vmatprep.subr.mxu0 %v3207_v34 }
0x141c   :  { %3107 = vmatpush3.msra.mxu0 %v2616_v29 }
0x141d   :  { %3108 = vmatprep.subr.mxu0 %v3207_v34 }
0x141e   :  { %3109 = vmatpush3.msra.mxu0 %v2615_v30 }
0x141f   :  { %3110 = vmatprep.subr.mxu0 %v3207_v34  ;;  %v2812_v34 = vld [vmem:[%s3785_s15 + $0x1] ss:$0 sm:$0xff] }
0x1420   :  { %3111 = vmatpush3.msra.mxu0 %v2614_v32 }
0x14d9   :  { %v3084_v56 = vpop.f32.mrf.mxu0 }
0x14da   :  { %v2439_v57 = vadd.f32 %v3084_v56, %v2794_v55 }
0x14db   :  { %v2433_v58 = vpop.f32.mrf.mxu0 }
0x14dc   :  { %v2445_v52 = vmul.f32 0.044715, %v2439_v57  ;;  %v2434_v59 = vadd.f32 %v2794_v55, %v2433_v58  ;;  %v2443_v10 = vmul.f32 0.5, %v2439_v57  ;;  %v2815_v55 = vld [vmem:[%s3787_s17] ss:$0 sm:$0xff] }
0x14de   :  { %v2447_v60 = vmul.f32 %v2445_v52, %v2439_v57  ;;  %v2444_v61 = vmul.f32 0.044715, %v2434_v59  ;;  %v2442_v8 = vmul.f32 0.5, %v2434_v59 }
0x14e0   :  { %v2449_v62 = vmul.f32 %v2447_v60, %v2439_v57  ;;  %v2446_v63 = vmul.f32 %v2444_v61, %v2434_v59 }
0x14e2   :  { %v2451_v0 = vadd.f32 %v2449_v62, %v2439_v57  ;;  %v2448_v1 = vmul.f32 %v2446_v63, %v2434_v59 }
0x14e4   :  { %v2453_v2 = vmul.f32 0.7978846, %v2451_v0  ;;  %v2450_v3 = vadd.f32 %v2448_v1, %v2434_v59 }
0x14e6   :  { %3175 = vtanh.f32 %v2453_v2  ;;  %v2452_v4 = vmul.f32 0.7978846, %v2450_v3 }
0x14e8   :  { %3177 = vtanh.f32 %v2452_v4 }
0x14f3   :  { %v3176_v5 = vpop.eup %3175 }
0x14f4   :  { %v2457_v7 = vadd.f32 1.0, %v3176_v5 }
0x14f5   :  { %v3178_v6 = vpop.eup %3177 }
0x14f6   :  { %v2456_v9 = vadd.f32 1.0, %v3178_v6  ;;  %v2459_v12 = vmul.f32 %v2457_v7, %v2443_v10 }
0x14f8   :  { %v2458_v11 = vmul.f32 %v2456_v9, %v2442_v8 }
0x14fa   :  { %3101 = vmatprep.mubr.msk.f32.mxu1 %vm1232_vm4, %v2458_v11 }
0x14fb   :  { %3102 = vmatmul.mubr.msk.f32.vlgmr.msra.gmra.mxu1 %vm1232_vm4, %v2459_v12 }
0x15bb   :  { %v3103_v14 = vpop.f32.mrf.mxu1 }
0x15bc   :  { %v2555_v33 = vadd.f32 %v3103_v14, %v2806_v13 }
0x15bd   :  { %v2549_v31 = vpop.f32.mrf.mxu1 }
0x15be   :  { %v2550_v15 = vadd.f32 %v2806_v13, %v2549_v31  ;;  %v2559_v16 = vadd.f32 %v2555_v33, %v2347_v45 }
0x15c0   :  { %v2567_v17 = vsel %vm68_vm0, %v2559_v16, 0.0  ;;  %v2558_v18 = vadd.f32 %v2550_v15, %v3690_v44  ;;  %v2811_v44 = vld [vmem:[%s3784_s14 + $0x1] ss:$0 sm:$0xff] }
0x15c1   :  { %2568 = vadd.xlane.f32.xlu0 %v2567_v17 }
0x15c2   :  { %v2564_v19 = vsel %vm68_vm0, %v2558_v18, 0.0 }
0x15c3   :  { %2565 = vadd.xlane.f32.xlu1 %v2564_v19 }
0x164a   :  { %v2569_v20 = vpop.xlane.xlu0 %2568 }
0x164b   :  { %v2571_v21 = vmul.f32 0.03125, %v2569_v20 }
0x164c   :  { %v2566_v46 = vpop.xlane.xlu1 %2565 }
0x164d   :  { %v2573_v47 = vsub.f32 %v2559_v16, %v2571_v21  ;;  %v2570_v22 = vmul.f32 0.03125, %v2566_v46 }
0x164f   :  { %v2572_v23 = vsub.f32 %v2558_v18, %v2570_v22  ;;  %v2575_v24 = vmul.f32 %v2573_v47, %v2573_v47 }
0x1651   :  { %v2579_v25 = vsel %vm68_vm0, %v2575_v24, 0.0  ;;  %v2574_v26 = vmul.f32 %v2572_v23, %v2572_v23 }
0x1652   :  { %2580 = vadd.xlane.f32.xlu0 %v2579_v25 }
0x1653   :  { %v2576_v27 = vsel %vm68_vm0, %v2574_v26, 0.0 }
0x1654   :  { %2577 = vadd.xlane.f32.xlu1 %v2576_v27 }
0x16db   :  { %v2581_v35 = vpop.xlane.xlu0 %2580 }
0x16dc   :  { %v2583_v36 = vmul.f32 0.03125, %v2581_v35 }
0x16dd   :  { %v2578_v38 = vpop.xlane.xlu1 %2577 }
0x16de   :  { %v2585_v40 = vadd.f32 1e-12, %v2583_v36  ;;  %v2582_v41 = vmul.f32 0.03125, %v2578_v38 }
0x16e0   :  { %3179 = vrsqrt.f32 %v2585_v40  ;;  %v2584_v37 = vadd.f32 1e-12, %v2582_v41 }
0x16e2   :  { %3181 = vrsqrt.f32 %v2584_v37 }
0x16ed   :  { %v3180_v42 = vpop.eup %3179 }
0x16ee   :  { %v2589_v45 = vmul.f32 %v3180_v42, %v2573_v47 }
0x16ef   :  { %v3182_v48 = vpop.eup %3181 }
0x16f0   :  { %v2588_v49 = vmul.f32 %v3182_v48, %v2572_v23  ;;  %v2597_v43 = vmul.f32 %v2811_v44, %v2589_v45 }
0x16f2   :  { %v2596_v50 = vmul.f32 %v2811_v44, %v2588_v49  ;;  %v2605_v51 = vadd.f32 %v2812_v34, %v2597_v43 }
0x16f4   :  { %v2604_v39 = vadd.f32 %v2812_v34, %v2596_v50  ;;  %2814 = vst.msk [vmem:[%s3788_s18 + $0x28] sm:$0xff] %vm68_vm0, %v2605_v51  ;;  %v2610_v53 = vrot.slane %v2605_v51, 7 }
0x16f6   :  { %2813 = vst.msk [vmem:[%s3788_s18 + $0x20] sm:$0xff] %vm68_vm0, %v2604_v39  ;;  %v2613_v54 = vsel %vm2612_vm5, %v2604_v39, %v2610_v53 }
0x16f7   :  { %3113 = vmatmul.mubr.msk.f32.vlgmr.msra.gmra.mxu0 %vm68_vm0, %v2613_v54 }
0x17b7   :  { %v2694_v56 = vpop.f32.mrf.mxu0 }
0x17b8   :  { %v2695_v57 = vadd.f32 %v2815_v55, %v2694_v56 }
0x17b9   :  { %v3114_v58 = vpop.f32.mrf.mxu0 }
0x17ba   :  { %3183 = vtanh.f32 %v2695_v57 }
0x17c7   :  { %v3184_v52 = vpop.eup %3183 }
0x17c8   :  { %2700 = vst.msk [vmem:[#allocation2] sm:$0x3] %vm2699_vm6, %v3184_v52 }
0x17c9   :  { %3196 = shalt.err (!%p3193_p4)
}
0x17ca   :  { %2712 = dma.vmem_to_hbm [thread:$0]  %s2710_s7, 32, %s3789_s19, [#allocation3]  }
0x17cb   :  { %3205 = dma.done.wait [#allocation3], 32  }
0x17cc   :  { %3206 = vsyncadd [#allocation3], 4294967264 }
0x17cd   :  { %2718 = vsyncpa [#allocation3], 1 }

</bundles_post_ra>
